<compile_context>
chip_gen: v7x
topology: tpu7x:2x2x1
jax: 0.10.0
libtpu: 0.0.40
codegen_flags: <defaults>
</compile_context>

<pallas_src>
import functools

import jax
import jax.numpy as jnp
from jax.experimental import pallas as pl
from jax.experimental.pallas import tpu as pltpu


def _round_up(x: int, m: int) -> int:
    return ((x + m - 1) // m) * m


# --------------------------------------------------------------------------
# Kernel 1: aggregation + degree norm + projection + bias + dropout + BN partials
# --------------------------------------------------------------------------
def _gcn_agg_kernel(
    adj_ref,    # (TM, TK)        int8  adjacency tile, adj[dst, src] in {0,1}
    xs_ref,     # (Np_c, Fin_p)   bf16  VMEM-resident src features * dout^{-1/2}
    w_ref,      # (Fin_p, Fout_p) bf16  GraphConv weight
    b_ref,      # (1, Fout_p)     f32   GraphConv bias
    mask_ref,   # (TM, Fout_p)    int8  dropout keep-mask; 0 also on padded rows/lanes
    h_ref,      # (TM, Fout_p)    bf16  out: post-dropout features
    psum_ref,   # (1, 1, Fout_p)  f32   out: per-dst-tile sum over nodes
    psq_ref,    # (1, 1, Fout_p)  f32   out: per-dst-tile sum of squares
    acc_ref,    # (TM, Fin_p)     f32   scratch: adj @ xs accumulator
    dsum_ref,   # (TM, 1)         f32   scratch: in-degree accumulator
    *,
    tk: int,
    inv_keep: float,
):
    # All grid queries at the top level (never inside pl.when bodies).
    k = pl.program_id(1)
    nk = pl.num_programs(1)

    @pl.when(k == 0)
    def _():
        acc_ref[...] = jnp.zeros_like(acc_ref)
        dsum_ref[...] = jnp.zeros_like(dsum_ref)

    # int8 adjacency from HBM; cast to bf16 for the MXU (0/1 -> lossless) and
    # to f32 for the in-kernel in-degree row sum.  VPU slots are idle here.
    adj_f = adj_ref[...].astype(jnp.float32)
    adj_bf = adj_f.astype(jnp.bfloat16)
    xs = xs_ref[pl.ds(k * tk, tk), :]          # slice the resident feature panel
    acc_ref[...] += jnp.dot(adj_bf, xs, preferred_element_type=jnp.float32)
    dsum_ref[...] += jnp.sum(adj_f, axis=1, keepdims=True)

    @pl.when(k == nk - 1)
    def _():
        # dst-side degree norm (DGL clamps degrees to >= 1), project, add bias.
        din = jax.lax.rsqrt(jnp.maximum(dsum_ref[...], 1.0))
        agg = (acc_ref[...] * din).astype(jnp.bfloat16)
        h = (jnp.dot(agg, w_ref[...], preferred_element_type=jnp.float32)
             + b_ref[...])
        # Inverted dropout.  The int8 mask is 0 on dropped entries AND on
        # padded rows / lanes, so this single select also keeps the BatchNorm
        # partial statistics exact — no iota / program_id epilogue needed.
        h = jnp.where(mask_ref[...] != 0, h * inv_keep, 0.0)
        h_ref[...] = h.astype(h_ref.dtype)
        psum_ref[...] = jnp.sum(h, axis=0, keepdims=True)[None]
        psq_ref[...] = jnp.sum(h * h, axis=0, keepdims=True)[None]


# --------------------------------------------------------------------------
# Kernel 2: apply BatchNorm affine normalization  y = h * scale + shift
# --------------------------------------------------------------------------
def _bn_apply_kernel(h_ref, scale_ref, shift_ref, o_ref):
    o_ref[...] = (h_ref[...].astype(jnp.float32) * scale_ref[...]
                  + shift_ref[...])


# --------------------------------------------------------------------------
# Wrapper
# --------------------------------------------------------------------------
def graph_conv_dropout_batch(
    adj, x, w, b, gamma, beta, *, seed=0, dropout_p=0.5, eps=1e-5,
    tm=512, tk=2048,
):
    """adj: (N, N) dense adjacency with adj[dst, src] != 0 for edge src->dst.

    tm: dst tile (multiple of 8/32), tk: src tile (multiple of 128).
    """
    N = adj.shape[0]
    Fin = x.shape[1]
    Fout = w.shape[1]

    # ---- tiling plan -------------------------------------------------------
    fin_p = _round_up(Fin, 128)
    fout_p = _round_up(Fout, 128)
    tm = min(tm, _round_up(N, 8))
    tk = min(tk, _round_up(N, 128))
    assert tm % 8 == 0 and tk % 128 == 0
    np_r = _round_up(N, tm)       # padded dst rows
    np_c = _round_up(N, tk)       # padded src cols
    n_dst = np_r // tm
    n_src = np_c // tk

    # ---- one-time graph prep (no f32 N^2 intermediates) ---------------------
    adj_i8 = (
        jnp.zeros((np_r, np_c), jnp.int8)
        .at[:N, :N].set((adj != 0).astype(jnp.int8))
    )
    # src out-degree from a single int8 reduce; dst in-degree is computed
    # inside kernel 1 (row-sum accumulator), so no extra N^2 pass for it.
    deg_out = jnp.maximum(
        jnp.sum(adj_i8, axis=0, dtype=jnp.int32).astype(jnp.float32), 1.0
    )[:N]

    # Fold src-side degree norm into the feature rows, cast to bf16.
    xs = (x.astype(jnp.float32) * jax.lax.rsqrt(deg_out)[:, None]).astype(jnp.bfloat16)
    xs_p = jnp.zeros((np_c, fin_p), jnp.bfloat16).at[:N, :Fin].set(xs)
    w_p = (
        jnp.zeros((fin_p, fout_p), jnp.bfloat16)
        .at[:Fin, :Fout].set(w.astype(jnp.bfloat16))
    )
    b_p = jnp.zeros((1, fout_p), jnp.float32).at[0, :Fout].set(b.astype(jnp.float32))

    # Dropout keep-mask as int8 (1 B/elem); padded rows / lanes are 0 so the
    # same select masks the padding for the BN statistics.
    if dropout_p > 0.0:
        keep = jax.random.bernoulli(
            jax.random.PRNGKey(seed), 1.0 - dropout_p, (N, Fout))
    else:
        keep = jnp.ones((N, Fout), dtype=bool)
    mask_p = jnp.zeros((np_r, fout_p), jnp.int8).at[:N, :Fout].set(
        keep.astype(jnp.int8))
    inv_keep = float(1.0 / (1.0 - dropout_p)) if dropout_p > 0.0 else 1.0

    # ---- VMEM budget for the chosen tiles ------------------------------------
    vmem_need = (
        2 * tm * tk * 1                # adj tiles (int8, double-buffered)
        + 2 * np_c * fin_p * 2         # resident xs (bf16)
        + 2 * fin_p * fout_p * 2       # weight
        + 2 * fout_p * 4               # bias
        + 2 * tm * fout_p * 1          # dropout mask tiles
        + 2 * tm * fout_p * 2          # h output tiles (bf16)
        + 4 * fout_p * 4               # psum / psq tiles
        + tm * fin_p * 4 + tm * 4      # f32 scratch accumulators
    )
    vmem_limit = min(max(2 * vmem_need, 32 << 20), 64 << 20)

    # ---- phase 1: GraphConv + dropout + BN partial stats ---------------------
    kernel1 = functools.partial(_gcn_agg_kernel, tk=tk, inv_keep=inv_keep)
    h, psum, psq = pl.pallas_call(
        kernel1,
        out_shape=(
            jax.ShapeDtypeStruct((np_r, fout_p), jnp.bfloat16),
            jax.ShapeDtypeStruct((n_dst, 1, fout_p), jnp.float32),
            jax.ShapeDtypeStruct((n_dst, 1, fout_p), jnp.float32),
        ),
        grid_spec=pltpu.PrefetchScalarGridSpec(
            num_scalar_prefetch=0,
            grid=(n_dst, n_src),                           # src (reduction) last
            in_specs=[
                pl.BlockSpec((tm, tk), lambda i, k: (i, k)),            # adj int8
                pl.BlockSpec((np_c, fin_p), lambda i, k: (0, 0)),       # xs resident
                pl.BlockSpec((fin_p, fout_p), lambda i, k: (0, 0)),     # w
                pl.BlockSpec((1, fout_p), lambda i, k: (0, 0)),         # b
                pl.BlockSpec((tm, fout_p), lambda i, k: (i, 0)),        # mask int8
            ],
            out_specs=(
                pl.BlockSpec((tm, fout_p), lambda i, k: (i, 0)),        # h bf16
                pl.BlockSpec((1, 1, fout_p), lambda i, k: (i, 0, 0)),   # psum
                pl.BlockSpec((1, 1, fout_p), lambda i, k: (i, 0, 0)),   # psq
            ),
            scratch_shapes=[
                pltpu.VMEM((tm, fin_p), jnp.float32),
                pltpu.VMEM((tm, 1), jnp.float32),
            ],
        ),
        compiler_params=pltpu.CompilerParams(
            dimension_semantics=("parallel", "arbitrary"),
            vmem_limit_bytes=vmem_limit),
    )(adj_i8, xs_p, w_p, b_p, mask_p)

    # ---- tiny global BN reduction in XLA (n_dst x Fout_p) ---------------------
    s1 = jnp.sum(psum, axis=(0, 1))
    s2 = jnp.sum(psq, axis=(0, 1))
    mean = s1 / N
    var = jnp.maximum(s2 / N - mean * mean, 0.0)   # biased var (training BN)
    inv_std = jax.lax.rsqrt(var + eps)
    gamma_p = jnp.zeros((fout_p,), jnp.float32).at[:Fout].set(gamma.astype(jnp.float32))
    beta_p = jnp.zeros((fout_p,), jnp.float32).at[:Fout].set(beta.astype(jnp.float32))
    scale = (gamma_p * inv_std).reshape(1, fout_p)
    shift = (beta_p - mean * gamma_p * inv_std).reshape(1, fout_p)

    # ---- phase 2: apply normalization ----------------------------------------
    y = pl.pallas_call(
        _bn_apply_kernel,
        out_shape=jax.ShapeDtypeStruct((np_r, fout_p), jnp.float32),
        grid_spec=pltpu.PrefetchScalarGridSpec(
            num_scalar_prefetch=0,
            grid=(n_dst,),
            in_specs=[
                pl.BlockSpec((tm, fout_p), lambda i: (i, 0)),
                pl.BlockSpec((1, fout_p), lambda i: (0, 0)),
                pl.BlockSpec((1, fout_p), lambda i: (0, 0)),
            ],
            out_specs=pl.BlockSpec((tm, fout_p), lambda i: (i, 0)),
        ),
        compiler_params=pltpu.CompilerParams(
            dimension_semantics=("parallel",)),
    )(h, scale, shift)

    return y[:N, :Fout]


# --------------------------------------------------------------------------
# Pure-JAX reference (same bf16 casts and same dropout keep-mask)
# --------------------------------------------------------------------------
def _reference(adj, x, w, b, gamma, beta, keep, dropout_p, eps):
    adj = (adj != 0).astype(jnp.float32)
    deg_in = jnp.maximum(adj.sum(1), 1.0)
    deg_out = jnp.maximum(adj.sum(0), 1.0)
    xs = (x.astype(jnp.float32) * jax.lax.rsqrt(deg_out)[:, None]).astype(jnp.bfloat16)
    agg = jnp.dot(adj.astype(jnp.bfloat16), xs, preferred_element_type=jnp.float32)
    agg = (agg * jax.lax.rsqrt(deg_in)[:, None]).astype(jnp.bfloat16)
    h = jnp.dot(agg, w.astype(jnp.bfloat16),
                preferred_element_type=jnp.float32) + b[None, :]
    if dropout_p > 0.0:
        h = jnp.where(keep, h * (1.0 / (1.0 - dropout_p)), 0.0)
    mean = h.mean(axis=0)
    var = jnp.maximum((h * h).mean(axis=0) - mean * mean, 0.0)
    inv_std = jax.lax.rsqrt(var + eps)
    h_q = h.astype(jnp.bfloat16).astype(jnp.float32)   # mirror the bf16 h store
    return h_q * (gamma * inv_std) + (beta - mean * gamma * inv_std)


if __name__ == "__main__":
    # Small synthetic problem: 256 graph nodes, in_feats=16, out_feats=32.
    # tm=tk=128 so the demo exercises multi-tile dst + a real src reduction.
    N, IN_FEATS, OUT_FEATS = 256, 16, 32
    SEED, P, EPS = 1234, 0.5, 1e-5

    key = jax.random.PRNGKey(0)
    k_adj, k_x, k_w = jax.random.split(key, 3)

    # Random directed graph as dense adjacency (dst, src), ~10% edge density.
    adj = jax.random.bernoulli(k_adj, 0.1, (N, N)).astype(jnp.float32)
    x = jax.random.normal(k_x, (N, IN_FEATS), dtype=jnp.float32)

    # GraphConv weight (xavier-uniform), bias zeros; BatchNorm gamma=1, beta=0.
    bound = (6.0 / (IN_FEATS + OUT_FEATS)) ** 0.5
    w = jax.random.uniform(
        k_w, (IN_FEATS, OUT_FEATS), minval=-bound, maxval=bound, dtype=jnp.float32
    )
    b = jnp.zeros((OUT_FEATS,), dtype=jnp.float32)
    gamma = jnp.ones((OUT_FEATS,), dtype=jnp.float32)
    beta = jnp.zeros((OUT_FEATS,), dtype=jnp.float32)

    out = graph_conv_dropout_batch(
        adj, x, w, b, gamma, beta, seed=SEED, dropout_p=P, eps=EPS,
        tm=128, tk=128,
    )
    out = jax.block_until_ready(out)

    assert out.shape == (N, OUT_FEATS)
    assert bool(jnp.all(jnp.isfinite(out)))

    # Correctness vs a pure-JAX reference using the same dropout keep-mask.
    keep = jax.random.bernoulli(jax.random.PRNGKey(SEED), 1.0 - P, (N, OUT_FEATS))
    ref = _reference(adj, x, w, b, gamma, beta, keep, P, EPS)
    max_err = float(jnp.max(jnp.abs(out - ref)))
    assert max_err < 2e-2, f"max abs err vs reference: {max_err}"

    print("KERNEL_OK")
</pallas_src>

<mosaic_0001>
module attributes {stable_mosaic.version = 11 : i64} {
  func.func @_gcn_agg_kernel(%arg0: i32, %arg1: i32, %arg2: memref<128x128xi8, #tpu.memory_space<vmem>>, %arg3: memref<256x128xbf16, #tpu.memory_space<vmem>>, %arg4: memref<128x128xbf16, #tpu.memory_space<vmem>>, %arg5: memref<1x128xf32, #tpu.memory_space<vmem>>, %arg6: memref<128x128xi8, #tpu.memory_space<vmem>>, %arg7: memref<128x128xbf16, #tpu.memory_space<vmem>>, %arg8: memref<1x1x128xf32, #tpu.memory_space<vmem>>, %arg9: memref<1x1x128xf32, #tpu.memory_space<vmem>>, %arg10: memref<128x128xf32, #tpu.memory_space<vmem>>, %arg11: memref<128x1xf32, #tpu.memory_space<vmem>>) attributes {dimension_semantics = [#tpu.dimension_semantics<parallel>, #tpu.dimension_semantics<arbitrary>], iteration_bounds = array<i64: 2, 2>, scalar_prefetch = 0 : i64, scratch_operands = 2 : i64, tpu.core_type = #tpu.core_type<tc>, window_params = [{transform_indices = @transform_0, window_bounds = array<i64: 128, 128>}, {pipeline_mode = #tpu.pipeline_mode<synchronous>, transform_indices = @transform_1, window_bounds = array<i64: 256, 128>}, {pipeline_mode = #tpu.pipeline_mode<synchronous>, transform_indices = @transform_2, window_bounds = array<i64: 128, 128>}, {pipeline_mode = #tpu.pipeline_mode<synchronous>, transform_indices = @transform_3, window_bounds = array<i64: 1, 128>}, {transform_indices = @transform_4, window_bounds = array<i64: 128, 128>}, {transform_indices = @transform_5, window_bounds = array<i64: 128, 128>}, {transform_indices = @transform_6, window_bounds = array<i64: 1, 1, 128>}, {transform_indices = @transform_7, window_bounds = array<i64: 1, 1, 128>}]} {
    %c0_i32 = arith.constant 0 : i32
    %0 = arith.cmpi eq, %arg1, %c0_i32 : i32
    %1 = arith.extui %0 : i1 to i32
    %c0_i32_0 = arith.constant 0 : i32
    %2 = arith.cmpi ne, %1, %c0_i32_0 : i32
    scf.if %2 {
      %cst_13 = arith.constant 0.000000e+00 : f32
      %21 = vector.broadcast %cst_13 : f32 to vector<128x128xf32>
      %c0_14 = arith.constant 0 : index
      %c0_15 = arith.constant 0 : index
      %22 = vector.load %arg10[%c0_14, %c0_15] : memref<128x128xf32, #tpu.memory_space<vmem>>, vector<128x128xf32>
      tpu.vector_store %arg10[%c0_14, %c0_15], %21 {strides = array<i32>} : memref<128x128xf32, #tpu.memory_space<vmem>>, vector<128x128xf32>,
      %cst_16 = arith.constant 0.000000e+00 : f32
      %23 = vector.broadcast %cst_16 : f32 to vector<128x1xf32>
      %c0_17 = arith.constant 0 : index
      %c0_18 = arith.constant 0 : index
      %24 = vector.load %arg11[%c0_17, %c0_18] : memref<128x1xf32, #tpu.memory_space<vmem>>, vector<128x1xf32>
      tpu.vector_store %arg11[%c0_17, %c0_18], %23 {strides = array<i32>} : memref<128x1xf32, #tpu.memory_space<vmem>>, vector<128x1xf32>,
    } else {
    }
    %c0 = arith.constant 0 : index
    %c0_1 = arith.constant 0 : index
    %3 = vector.load %arg2[%c0, %c0_1] : memref<128x128xi8, #tpu.memory_space<vmem>>, vector<128x128xi8>
    %4 = arith.sitofp %3 : vector<128x128xi8> to vector<128x128xf32>
    %5 = arith.truncf %4 : vector<128x128xf32> to vector<128x128xbf16>
    %c128_i32 = arith.constant 128 : i32
    %6 = arith.muli %arg1, %c128_i32 : i32
    %7 = arith.index_cast %6 : i32 to index
    %c0_2 = arith.constant 0 : index
    %8 = vector.load %arg3[%7, %c0_2] : memref<256x128xbf16, #tpu.memory_space<vmem>>, vector<128x128xbf16>
    %c0_3 = arith.constant 0 : index
    %c0_4 = arith.constant 0 : index
    %9 = vector.load %arg10[%c0_3, %c0_4] : memref<128x128xf32, #tpu.memory_space<vmem>>, vector<128x128xf32>
    %cst = arith.constant dense<0.000000e+00> : vector<128x128xf32>
    %10 = tpu.matmul %5, %8, %cst {dimension_numbers = #tpu.dot_dimension_numbers<[1], [0], [0], [1], [0, 0, 1, 1], [], []>} : vector<128x128xbf16>, vector<128x128xbf16>, vector<128x128xf32> -> vector<128x128xf32>
    %11 = arith.addf %9, %10 : vector<128x128xf32>
    %c0_5 = arith.constant 0 : index
    %c0_6 = arith.constant 0 : index
    %12 = vector.load %arg10[%c0_5, %c0_6] : memref<128x128xf32, #tpu.memory_space<vmem>>, vector<128x128xf32>
    tpu.vector_store %arg10[%c0_5, %c0_6], %11 {strides = array<i32>} : memref<128x128xf32, #tpu.memory_space<vmem>>, vector<128x128xf32>,
    %c0_7 = arith.constant 0 : index
    %c0_8 = arith.constant 0 : index
    %13 = vector.load %arg11[%c0_7, %c0_8] : memref<128x1xf32, #tpu.memory_space<vmem>>, vector<128x1xf32>
    %cst_9 = arith.constant dense<0.000000e+00> : vector<128xf32>
    %14 = vector.multi_reduction <add>, %4, %cst_9 [1] : vector<128x128xf32> to vector<128xf32>
    %15 = vector.shape_cast %14 : vector<128xf32> to vector<128x1xf32>
    %16 = arith.addf %13, %15 : vector<128x1xf32>
    %c0_10 = arith.constant 0 : index
    %c0_11 = arith.constant 0 : index
    %17 = vector.load %arg11[%c0_10, %c0_11] : memref<128x1xf32, #tpu.memory_space<vmem>>, vector<128x1xf32>
    tpu.vector_store %arg11[%c0_10, %c0_11], %16 {strides = array<i32>} : memref<128x1xf32, #tpu.memory_space<vmem>>, vector<128x1xf32>,
    %c1_i32 = arith.constant 1 : i32
    %18 = arith.cmpi eq, %arg1, %c1_i32 : i32
    %19 = arith.extui %18 : i1 to i32
    %c0_i32_12 = arith.constant 0 : i32
    %20 = arith.cmpi ne, %19, %c0_i32_12 : i32
    scf.if %20 {
      %c0_13 = arith.constant 0 : index
      %c0_14 = arith.constant 0 : index
      %21 = vector.load %arg11[%c0_13, %c0_14] : memref<128x1xf32, #tpu.memory_space<vmem>>, vector<128x1xf32>
      %cst_15 = arith.constant 1.000000e+00 : f32
      %22 = vector.broadcast %cst_15 : f32 to vector<128x1xf32>
      %23 = arith.maximumf %21, %22 : vector<128x1xf32>
      %24 = math.rsqrt %23 : vector<128x1xf32>
      %c0_16 = arith.constant 0 : index
      %c0_17 = arith.constant 0 : index
      %25 = vector.load %arg10[%c0_16, %c0_17] : memref<128x128xf32, #tpu.memory_space<vmem>>, vector<128x128xf32>
      %26 = vector.broadcast %24 : vector<128x1xf32> to vector<128x128xf32>
      %27 = arith.mulf %25, %26 : vector<128x128xf32>
      %28 = arith.truncf %27 : vector<128x128xf32> to vector<128x128xbf16>
      %c0_18 = arith.constant 0 : index
      %c0_19 = arith.constant 0 : index
      %29 = vector.load %arg4[%c0_18, %c0_19] : memref<128x128xbf16, #tpu.memory_space<vmem>>, vector<128x128xbf16>
      %cst_20 = arith.constant dense<0.000000e+00> : vector<128x128xf32>
      %30 = tpu.matmul %28, %29, %cst_20 {dimension_numbers = #tpu.dot_dimension_numbers<[1], [0], [0], [1], [0, 0, 1, 1], [], []>} : vector<128x128xbf16>, vector<128x128xbf16>, vector<128x128xf32> -> vector<128x128xf32>
      %c0_21 = arith.constant 0 : index
      %c0_22 = arith.constant 0 : index
      %31 = vector.load %arg5[%c0_21, %c0_22] : memref<1x128xf32, #tpu.memory_space<vmem>>, vector<1x128xf32>
      %32 = vector.broadcast %31 : vector<1x128xf32> to vector<128x128xf32>
      %33 = arith.addf %30, %32 : vector<128x128xf32>
      %c0_23 = arith.constant 0 : index
      %c0_24 = arith.constant 0 : index
      %34 = vector.load %arg6[%c0_23, %c0_24] : memref<128x128xi8, #tpu.memory_space<vmem>>, vector<128x128xi8>
      %c0_i8 = arith.constant 0 : i8
      %35 = vector.broadcast %c0_i8 : i8 to vector<128x128xi8>
      %36 = arith.cmpi ne, %34, %35 : vector<128x128xi8>
      %cst_25 = arith.constant 2.000000e+00 : f32
      %37 = vector.broadcast %cst_25 : f32 to vector<128x128xf32>
      %38 = arith.mulf %33, %37 : vector<128x128xf32>
      %cst_26 = arith.constant 0.000000e+00 : f32
      %39 = vector.broadcast %cst_26 : f32 to vector<128x128xf32>
      %40 = arith.select %36, %38, %39 : vector<128x128xi1>, vector<128x128xf32>
      %41 = arith.truncf %40 : vector<128x128xf32> to vector<128x128xbf16>
      %c0_27 = arith.constant 0 : index
      %c0_28 = arith.constant 0 : index
      %42 = vector.load %arg7[%c0_27, %c0_28] : memref<128x128xbf16, #tpu.memory_space<vmem>>, vector<128x128xbf16>
      tpu.vector_store %arg7[%c0_27, %c0_28], %41 {strides = array<i32>} : memref<128x128xbf16, #tpu.memory_space<vmem>>, vector<128x128xbf16>,
      %cst_29 = arith.constant dense<0.000000e+00> : vector<128xf32>
      %43 = vector.multi_reduction <add>, %40, %cst_29 [0] : vector<128x128xf32> to vector<128xf32>
      %44 = vector.shape_cast %43 : vector<128xf32> to vector<1x128xf32>
      %45 = vector.shape_cast %44 : vector<1x128xf32> to vector<1x1x128xf32>
      %c0_30 = arith.constant 0 : index
      %c0_31 = arith.constant 0 : index
      %c0_32 = arith.constant 0 : index
      %46 = vector.load %arg8[%c0_30, %c0_31, %c0_32] : memref<1x1x128xf32, #tpu.memory_space<vmem>>, vector<1x1x128xf32>
      tpu.vector_store %arg8[%c0_30, %c0_31, %c0_32], %45 {strides = array<i32>} : memref<1x1x128xf32, #tpu.memory_space<vmem>>, vector<1x1x128xf32>,
      %47 = arith.mulf %40, %40 : vector<128x128xf32>
      %cst_33 = arith.constant dense<0.000000e+00> : vector<128xf32>
      %48 = vector.multi_reduction <add>, %47, %cst_33 [0] : vector<128x128xf32> to vector<128xf32>
      %49 = vector.shape_cast %48 : vector<128xf32> to vector<1x128xf32>
      %50 = vector.shape_cast %49 : vector<1x128xf32> to vector<1x1x128xf32>
      %c0_34 = arith.constant 0 : index
      %c0_35 = arith.constant 0 : index
      %c0_36 = arith.constant 0 : index
      %51 = vector.load %arg9[%c0_34, %c0_35, %c0_36] : memref<1x1x128xf32, #tpu.memory_space<vmem>>, vector<1x1x128xf32>
      tpu.vector_store %arg9[%c0_34, %c0_35, %c0_36], %50 {strides = array<i32>} : memref<1x1x128xf32, #tpu.memory_space<vmem>>, vector<1x1x128xf32>,
    } else {
    }
    return
  }
  func.func @transform_0(%arg0: i32, %arg1: i32) -> (i32, i32) {
    %c0_i32 = arith.constant 0 : i32
    return %arg0, %arg1 : i32, i32
  }
  func.func @transform_1(%arg0: i32, %arg1: i32) -> (i32, i32) {
    %c0_i32 = arith.constant 0 : i32
    %c0_i32_0 = arith.constant 0 : i32
    %c0_i32_1 = arith.constant 0 : i32
    return %c0_i32, %c0_i32_0 : i32, i32
  }
  func.func @transform_2(%arg0: i32, %arg1: i32) -> (i32, i32) {
    %c0_i32 = arith.constant 0 : i32
    %c0_i32_0 = arith.constant 0 : i32
    %c0_i32_1 = arith.constant 0 : i32
    return %c0_i32, %c0_i32_0 : i32, i32
  }
  func.func @transform_3(%arg0: i32, %arg1: i32) -> (i32, i32) {
    %c0_i32 = arith.constant 0 : i32
    %c0_i32_0 = arith.constant 0 : i32
    %c0_i32_1 = arith.constant 0 : i32
    return %c0_i32, %c0_i32_0 : i32, i32
  }
  func.func @transform_4(%arg0: i32, %arg1: i32) -> (i32, i32) {
    %c0_i32 = arith.constant 0 : i32
    %c0_i32_0 = arith.constant 0 : i32
    return %arg0, %c0_i32 : i32, i32
  }
  func.func @transform_5(%arg0: i32, %arg1: i32) -> (i32, i32) {
    %c0_i32 = arith.constant 0 : i32
    %c0_i32_0 = arith.constant 0 : i32
    return %arg0, %c0_i32 : i32, i32
  }
  func.func @transform_6(%arg0: i32, %arg1: i32) -> (i32, i32, i32) {
    %c0_i32 = arith.constant 0 : i32
    %c0_i32_0 = arith.constant 0 : i32
    %c0_i32_1 = arith.constant 0 : i32
    return %arg0, %c0_i32, %c0_i32_0 : i32, i32, i32
  }
  func.func @transform_7(%arg0: i32, %arg1: i32) -> (i32, i32, i32) {
    %c0_i32 = arith.constant 0 : i32
    %c0_i32_0 = arith.constant 0 : i32
    %c0_i32_1 = arith.constant 0 : i32
    return %arg0, %c0_i32, %c0_i32_0 : i32, i32, i32
  }
}

</mosaic_0001>

<bundles_post_ra>
// kernel: tpu_custom_call.1
= control target key start
LH: loop header
LB: loop body
LE: loop exit
PB: predicated region body
PF: predicated region fallthrough
CT: control target
= control target key end

     0   :  { %s3169_s0 = inlined_call_operand.hbm [shape: s8[256,256], index: 0, kind: input, shape index: {}]   ;;  %s3170_s1 = inlined_call_operand.hbm [shape: bf16[256,128], index: 1, kind: input, shape index: {}]   ;;  %s3171_s2 = inlined_call_operand.hbm [shape: bf16[128,128], index: 2, kind: input, shape index: {}]   ;;  %s3172_s3 = inlined_call_operand.vmem [shape: f32[1,128], index: 3, kind: input, shape index: {}]   ;;  %s3173_s4 = inlined_call_operand.hbm [shape: s8[256,128], index: 4, kind: input, shape index: {}]   ;;  %s3174_s5 = inlined_call_operand.hbm [shape: bf16[256,128], index: 5, kind: output, shape index: {0}]   ;;  %s3175_s6 = inlined_call_operand.hbm [shape: f32[2,1,128], index: 6, kind: output, shape index: {1}]   ;;  %s3176_s7 = inlined_call_operand.hbm [shape: f32[2,1,128], index: 7, kind: output, shape index: {2}]  }
   0x1   :  { %3194 = sst [smem:[#allocation25_spill]] %s3169_s0 }
   0x2   :  { %3195 = sst [smem:[#allocation26_spill]] %s3170_s1 }
   0x3   :  { %3196 = sst [smem:[#allocation27_spill]] %s3171_s2 }
   0x4   :  { %3197 = sst [smem:[#allocation28_spill]] %s3172_s3 }
   0x5   :  { %3198 = sst [smem:[#allocation29_spill]] %s3174_s5 }
   0x6   :  { %3199 = sst [smem:[#allocation30_spill]] %s3175_s6 }
   0x7   :  { %3200 = sst [smem:[#allocation31_spill]] %s3176_s7 }
   0x8   :  { %13 = vsyncpa [#allocation5], 0 }
   0x9   :  { %15 = vsyncpa [#allocation5 + $0x1], 0 }
   0xa   :  { %16 = vsyncpa [#allocation8], 0 }
   0xb   :  { %17 = vsyncpa [#allocation11], 0 }
   0xc   :  { %19 = vsyncpa [#allocation11 + $0x1], 0 }
   0xd   :  { %20 = vsyncpa [#allocation6], 0 }
   0xe   :  { %22 = vsyncpa [#allocation6 + $0x1], 0 }
   0xf   :  { %23 = vsyncpa [#allocation14], 0 }
  0x10   :  { %25 = vsyncpa [#allocation14 + $0x1], 0  ;;  %s2465_s24 = smov 0   ;;  %s2467_s25 = smov 0  }
  0x11   :  { %s2469_s26 = smov 0   ;;  %s2471_s27 = smov 0  }
  0x12   :  { %s2473_s28 = smov 0   ;;  %s2475_s29 = smov 0  }
  0x13   :  { %s2477_s30 = smov 0   ;;  %s2479_s8 = smov 0  }
  0x14   :  { %s2481_s9 = smov 0   ;;  %s2483_s10 = smov 0  }
  0x15   :  { %s2485_s11 = smov 0  }
  0x16 LB: > { %3201 = sst [smem:[#allocation21_spill]] %s2367_s24  ;;  %s2519_s12 = sadd.s32 4294967295, %s2407_s11   ;;  %s2407_s11 = sphi %s2485_s11, %s31_s11   ;;  %s2403_s10 = sphi %s2483_s10, %s3287_s10   ;;  %s2399_s9 = sphi %s2481_s9, %s3286_s9   ;;  %s2395_s8 = sphi %s2479_s8, %s3285_s8   ;;  %s2391_s30 = sphi %s2477_s30, %s3284_s30   ;;  %s2387_s29 = sphi %s2475_s29, %s3283_s29   ;;  %s2383_s28 = sphi %s2473_s28, %s3282_s28   ;;  %s2379_s27 = sphi %s2471_s27, %s3281_s27   ;;  %s2375_s26 = sphi %s2469_s26, %s3280_s26   ;;  %s2371_s25 = sphi %s2467_s25, %s3279_s25   ;;  %s2367_s24 = sphi %s2465_s24, %s3278_s24  }
  0x17   : > { %3202 = sst [smem:[#allocation22_spill]] %s2395_s8  ;;  %s3177_s13 = sadd.s32 4294967294, %s2407_s11  }
  0x18   : > { %p65_p0 = scmp.ne.s32.totalorder %s2383_s28, %s2379_s27  ;;  %p3181_p1 = scmp.eq.s32.totalorder %s2519_s12, 0 }
  0x19   : > { %p154_p2 = scmp.ne.s32.totalorder %s2371_s25, %s2367_s24  ;;  %p184_p5 = scmp.eq.s32.totalorder %s3177_s13, 3 }
  0x1a   : > { %p2529_p4 = por %p3181_p1, %p65_p0  ;;  %p1649_p7 = scmp.ge.s32.totalorder %s2407_s11, 1 }
  0x1b   : > { %p2537_p6 = por %p154_p2, %p3181_p1  ;;  %p2542_p8 = por %p184_p5, %p154_p2 }
  0x1c   : > { %s3203_s14 = scalar_select %p2529_p4, 1, 0 }
  0x1d   : > { %s3204_s15 = scalar_select %p2537_p6, 1, 0 }
  0x1e   : > { %s3205_s16 = scalar_select %p2542_p8, 1, 0 }
  0x1f   : > { %p243_p9 = scmp.lt.s32.totalorder %s2407_s11, 5  ;;  %s2409_s18 = smov [#allocation7]  }
  0x20   : > { %3206 = sst [smem:[#allocation23_spill]] %s3205_s16  ;;  %s255_s19 = sshll.u32 %s2409_s18, 4  ;;  %s256_s19 = int_to_ptr.vmem [resolvable:$true] %s255_s19 }
  0x21   : > { %p2547_p10 = pnand %p1649_p7, %p243_p9  ;;  %s2410_s21 = smov [#allocation9]  }
  0x22   : > { %s268_s22 = sshll.u32 %s2410_s21, 4  ;;  %s3209_s1 = sld [smem:[#allocation26_spill]]  ;;  %s2559_s22 = int_to_ptr.vmem [resolvable:$true] %s268_s22 }
  0x23   : > { %s3207_s17 = scalar_select %p2547_p10, 1, 0 }
  0x24   : > { %p1922_p11 = pneg %p2547_p10 }
  0x26   : > { %p2555_p12 = pnand %p1922_p11, %p3181_p1 }
  0x28   : > { %s2101_s13 = scalar_lea.hbm %s3209_s1, 2048  ;;  %p2103_p0 = pneg %p2555_p12 }
  0x29   : > { %p2102_p13 = scmp.ne.s32.totalorder %s3209_s1, %s2101_s13  ;;  %p2108_p7 = scmp.lt.u32.totalorder %s2101_s13, %s3209_s1 }
  0x2b   : > { %p2104_p2 = pnand %p2103_p0, %p2102_p13 }
  0x2d   : > { %p2105_p5 = pneg %p2104_p2 }
  0x2f   : > { %p2110_p9 = pnand %p2108_p7, %p2105_p5 }
  0x31   : > { %2113 = shalt.err (!%p2110_p9)
}
  0x32   : > { %s2114_s21 = scalar_lea.vmem %s256_s19, 2048  ;;  %p2122_p8 = scmp.lt.s32.totalorder %s256_s19, %s256_s19 }
  0x33   : > { %p2115_p11 = scmp.ne.s32.totalorder %s256_s19, %s2114_s21  ;;  %p2123_p6 = scmp.lt.s32.totalorder %s2114_s21, %s2114_s21 }
  0x35   : > { %p2117_p1 = pnand %p2115_p11, %p2103_p0  ;;  %p2124_p4 = por %p2123_p6, %p2122_p8 }
  0x37   : > { %p2118_p3 = pneg %p2117_p1 }
  0x39   : > { %p2125_p10 = pnand %p2124_p4, %p2118_p3 }
  0x3b   : > { %2128 = shalt.err (!%p2125_p10)
}
  0x3c   : > { %s2411_s16 = smov 64   ;;  %s2412_s23 = smov 4  }
  0x3d   : > { %1925 = dma.hbm_to_vmem [thread:$0]  (!%p2555_p12), %s3209_s1, 2048, %s256_s19, [#allocation8], %s2411_s16, %s2411_s16, %s2412_s23  }
  0x3e   : > { %s3210_s2 = sld [smem:[#allocation27_spill]] }
  0x44   : > { %s2129_s18 = scalar_lea.hbm %s3210_s2, 1024 }
  0x45   : > { %p2130_p1 = scmp.ne.s32.totalorder %s3210_s2, %s2129_s18  ;;  %p2136_p6 = scmp.lt.u32.totalorder %s2129_s18, %s3210_s2 }
  0x47   : > { %p2132_p3 = pnand %p2130_p1, %p2103_p0 }
  0x49   : > { %p2133_p4 = pneg %p2132_p3 }
  0x4b   : > { %p2138_p8 = pnand %p2136_p6, %p2133_p4 }
  0x4d   : > { %2141 = shalt.err (!%p2138_p8)
}
  0x4e   : > { %s2142_s19 = scalar_lea.vmem %s2559_s22, 1024  ;;  %p2150_p5 = scmp.lt.s32.totalorder %s2559_s22, %s2559_s22 }
  0x4f   : > { %p2143_p10 = scmp.ne.s32.totalorder %s2559_s22, %s2142_s19  ;;  %p2151_p7 = scmp.lt.s32.totalorder %s2142_s19, %s2142_s19 }
  0x51   : > { %p2145_p13 = pnand %p2143_p10, %p2103_p0  ;;  %p2152_p9 = por %p2151_p7, %p2150_p5 }
  0x53   : > { %p2146_p2 = pneg %p2145_p13 }
  0x55   : > { %p2153_p11 = pnand %p2152_p9, %p2146_p2 }
  0x57   : > { %2156 = shalt.err (!%p2153_p11)
}
  0x58   : > { %1928 = dma.hbm_to_vmem [thread:$0]  (!%p2555_p12), %s3210_s2, 1024, %s2559_s22, [#allocation8], %s2411_s16, %s2411_s16, %s2412_s23  }
  0x59   : > { %s40_s8 = sadd.s32 1, %s2399_s9  ;;  %s43_s20 = sadd.s32 1, %s2403_s10 }
  0x5a   : > { %p41_p0 = scmp.ge.s32.totalorder %s40_s8, 2  ;;  %s52_s7 = sadd.s32 1, %s2387_s29 }
  0x5b   : > { %p59_p1 = scmp.ne.s32.totalorder %s2387_s29, %s2383_s28  ;;  %p3190_p3 = scmp.eq.s32.totalorder %s2407_s11, 0 }
  0x5c   : > { %s3289_s8 = smov (%p41_p0, %s40_s8), 0  ;;  %s3291_s20 = smov (!%p41_p0, %s43_s20), %s2403_s10 }
  0x5d   : > { %3211 = sst [smem:[#allocation24_spill]] %s3289_s8  ;;  %s48_s24 = ssub.s32 %s2399_s9, %s3289_s8 }
  0x5e   : > { %p2621_p4 = por %p3190_p3, %p59_p1  ;;  %p45_p12 = scmp.ge.s32.totalorder %s3291_s20, 2 }
  0x5f   : > { %p3189_p6 = scmp.lt.s32.totalorder %s2407_s11, 4  ;;  %s285_s22 = sand.u32 1, %s2387_s29  }
  0x60   : > { %s1710_s16 = sshll.u32 %s2403_s10, 3  ;;  %s3293_s20 = smov (%p45_p12, %s3291_s20), 0 }
  0x61   : > { %s1653_s23 = sshll.u32 %s285_s22, 5  ;;  %s2632_s27 = ssub.s32 %s2403_s10, %s3293_s20 }
  0x62   : > { %s49_s18 = sor.u32 %s48_s24, %s2632_s27  ;;  %p139_p8 = scmp.eq.s32.totalorder %s2632_s27, 0 }
  0x63   : > { %p50_p10 = scmp.eq.s32.totalorder %s49_s18, 0  ;;  %s295_s21 = sadd.s32 %s2399_s9, %s1710_s16 }
  0x64   : > { %s1656_s19 = sshll.u32 %s295_s21, 7  ;;  %s289_s5 = scalar_lea.vmem [#allocation4], %s1653_s23 }
  0x65   : > { %s298_s6 = sshll.u32 %s289_s5, 4  ;;  %s3213_s0 = sld [smem:[#allocation25_spill]]  ;;  %s2645_s6 = int_to_ptr.vmem [resolvable:$true] %s298_s6 }
  0x66   : > { %s2638_s1 = scalar_select %p50_p10, %s2387_s29, %s52_s7  }
  0x67   : > { %p2651_p13 = pnand %p3189_p6, %p2621_p4  ;;  %s2655_s7 = scalar_lea.sflag [#allocation5], %s285_s22 }
  0x69   : > { %p2159_p5 = pneg %p2651_p13 }
  0x6b   : > { %s2643_s3 = scalar_lea.hbm %s3213_s0, %s1656_s19  ;;  %s2162_s13 = scalar_lea.hbm %s3213_s0, 2048 }
  0x6c   : > { %s2157_s16 = scalar_lea.hbm %s2643_s3, 512  ;;  %p2163_p11 = scmp.lt.u32.totalorder %s2643_s3, %s3213_s0 }
  0x6d   : > { %p2158_p2 = scmp.ne.s32.totalorder %s2643_s3, %s2157_s16  ;;  %p2164_p0 = scmp.lt.u32.totalorder %s2162_s13, %s2157_s16 }
  0x6e   : > { %p2166_p4 = scmp.lt.u32.totalorder %s2157_s16, %s2643_s3 }
  0x6f   : > { %p2160_p7 = pnand %p2159_p5, %p2158_p2  ;;  %p2165_p1 = por %p2164_p0, %p2163_p11 }
  0x71   : > { %p2161_p9 = pneg %p2160_p7  ;;  %p2167_p12 = por %p2166_p4, %p2165_p1 }
  0x73   : > { %p2168_p10 = pnand %p2167_p12, %p2161_p9 }
  0x75   : > { %2171 = shalt.err (!%p2168_p10)
}
  0x76   : > { %s2172_s22 = scalar_lea.vmem %s2645_s6, 512  ;;  %s2413_s21 = smov [#allocation4]  }
  0x77   : > { %p2173_p2 = scmp.ne.s32.totalorder %s2645_s6, %s2172_s22  ;;  %s2177_s19 = sshll.u32 %s2413_s21, 4  ;;  %s2178_s19 = int_to_ptr.vmem [resolvable:$false] %s2177_s19 }
  0x78   : > { %s2179_s5 = scalar_lea.vmem %s2178_s19, 1024  ;;  %p2180_p3 = scmp.lt.s32.totalorder %s2645_s6, %s2178_s19 }
  0x79   : > { %p2175_p7 = pnand %p2173_p2, %p2159_p5  ;;  %p2181_p11 = scmp.lt.s32.totalorder %s2179_s5, %s2172_s22 }
  0x7b   : > { %p2176_p6 = pneg %p2175_p7  ;;  %p2182_p0 = por %p2181_p11, %p2180_p3 }
  0x7d   : > { %p2183_p1 = pnand %p2182_p0, %p2176_p6 }
  0x7f   : > { %2186 = shalt.err (!%p2183_p1)
}
  0x80   : > { %s2414_s16 = smov 256   ;;  %s3191_s2 = smov 128  }
  0x81   : > { %s3192_s8 = smov 8   ;;  %s1711_s13 = sshll.u32 %s2403_s10, 9 }
  0x82   : > { %1932 = dma.hbm_to_vmem [thread:$0]  (!%p2651_p13), %s2643_s3, 512, %s2645_s6, %s2655_s7, %s2414_s16, %s3191_s2, %s3192_s8  }
  0x83   : > { %s141_s23 = sadd.s32 1, %s2375_s26  ;;  %p148_p3 = scmp.ne.s32.totalorder %s2375_s26, %s2371_s25 }
  0x84   : > { %s2692_s18 = scalar_select %p139_p8, %s2375_s26, %s141_s23  }
  0x85   : > { %p3215_p6 = scmp.eq.s32.totalorder %s2407_s11, 0  ;;  %p3216_p9 = scmp.eq.s32.totalorder %s2519_s12, 3 }
  0x86   : > { %s308_s21 = sand.u32 1, %s2375_s26   ;;  %s2706_s24 = scalar_lea.hbm %s3173_s4, %s1711_s13 }
  0x87   : > { %p150_p5 = por %p148_p3, %p3215_p6  ;;  %p2698_p4 = por %p3216_p9, %p148_p3 }
  0x88   : > { %s1657_s3 = sshll.u32 %s308_s21, 5  ;;  %p3218_p8 = scmp.lt.s32.totalorder %s2407_s11, 4 }
  0x89   : > { %s312_s6 = scalar_lea.vmem [#allocation10], %s1657_s3  ;;  %s2716_s16 = scalar_lea.sflag [#allocation11], %s308_s21 }
  0x8a   : > { %p2710_p13 = pnand %p3218_p8, %p150_p5  ;;  %s319_s7 = sshll.u32 %s312_s6, 4  ;;  %s2714_s7 = int_to_ptr.vmem [resolvable:$true] %s319_s7 }
  0x8b   : > { %s2187_s13 = scalar_lea.hbm %s2706_s24, 512  ;;  %s2192_s5 = scalar_lea.hbm %s3173_s4, 1024 }
  0x8c   : > { %p2188_p12 = scmp.ne.s32.totalorder %s2706_s24, %s2187_s13  ;;  %p2189_p10 = pneg %p2710_p13 }
  0x8d   : > { %p2193_p11 = scmp.lt.u32.totalorder %s2706_s24, %s3173_s4  ;;  %p2194_p0 = scmp.lt.u32.totalorder %s2192_s5, %s2187_s13 }
  0x8e   : > { %p2190_p2 = pnand %p2189_p10, %p2188_p12  ;;  %p2196_p3 = scmp.lt.u32.totalorder %s2187_s13, %s2706_s24 }
  0x8f   : > { %p2195_p1 = por %p2194_p0, %p2193_p11 }
  0x90   : > { %p2191_p7 = pneg %p2190_p2 }
  0x91   : > { %p2197_p6 = por %p2196_p3, %p2195_p1 }
  0x93   : > { %p2198_p5 = pnand %p2197_p6, %p2191_p7 }
  0x95   : > { %2201 = shalt.err (!%p2198_p5)
}
  0x96   : > { %s2202_s21 = scalar_lea.vmem %s2714_s7, 512  ;;  %s2417_s3 = smov [#allocation10]  }
  0x97   : > { %p2203_p9 = scmp.ne.s32.totalorder %s2714_s7, %s2202_s21  ;;  %s2207_s6 = sshll.u32 %s2417_s3, 4  ;;  %s2208_s6 = int_to_ptr.vmem [resolvable:$false] %s2207_s6 }
  0x98   : > { %s2209_s2 = scalar_lea.vmem %s2208_s6, 1024  ;;  %p2210_p2 = scmp.lt.s32.totalorder %s2714_s7, %s2208_s6 }
  0x99   : > { %p2205_p8 = pnand %p2203_p9, %p2189_p10  ;;  %p2211_p11 = scmp.lt.s32.totalorder %s2209_s2, %s2202_s21 }
  0x9b   : > { %p2206_p12 = pneg %p2205_p8  ;;  %p2212_p0 = por %p2211_p11, %p2210_p2 }
  0x9d   : > { %p2213_p1 = pnand %p2212_p0, %p2206_p12 }
  0x9f   : > { %2216 = shalt.err (!%p2213_p1)
}
  0xa0   : > { %s3220_s8 = smov 8   ;;  %s3221_s13 = smov 128  }
  0xa1   : > { %1935 = dma.hbm_to_vmem [thread:$0]  (!%p2710_p13), %s2706_s24, 512, %s2714_s7, %s2716_s16, %s3221_s13, %s3221_s13, %s3220_s8  }
  0xa2   : > { %p3222_p10 = scmp.ne.s32.totalorder %s3207_s17, 0 }
  0xa3   : > { %s333_s23 = sand.u32 (!%p3222_p10), 1, %s2383_s28   ;;  %p3223_p7 = scmp.ne.s32.totalorder (!%p3222_p10), %s3203_s14, 0 }
  0xa4   : > { %331 = sbr.rel (%p3222_p10) target bundleno = 935 (0x3a7), region = 40  ;;  %s1661_s19 = sshll.u32 (!%p3222_p10), %s333_s23, 5 }
  0xa5   : > { %s334_s5 = scalar_lea.sflag (!%p3222_p10), [#allocation5], %s333_s23  ;;  %s2750_s21 = scalar_lea.vmem (!%p3222_p10), [#allocation4], %s1661_s19 }
  0xab   : > { %2346 = dma.done.wait (%p3223_p7), %s334_s5, 512  }
  0xac   : > { %2348 = vsyncadd (%p3223_p7), %s334_s5, 4294966784  ;;  %p3224_p3 = scmp.eq.s32.totalorder %s2519_s12, 0 }
  0xae   : > { %2350 = dma.done.wait (%p3224_p3), [#allocation8], 3072   ;;  %p3225_p13 = pmov %p3224_p3 }
  0xaf   : > { %s2761_s17 = sand.u32 1, %s2371_s25   ;;  %p3226_p6 = scmp.ne.s32.totalorder %s3204_s15, 0 }
  0xb0   : > { %2352 = vsyncadd (%p3225_p13), [#allocation8], 4294964224  ;;  %s1664_s24 = sshll.u32 %s2761_s17, 5  ;;  %s351_s27 = scalar_lea.sflag [#allocation11], %s2761_s17 }
  0xb1   : > { %s2765_s7 = scalar_lea.vmem [#allocation10], %s1664_s24 }
  0xb2   : > { %2354 = dma.done.wait (%p3226_p6), %s351_s27, 512  }
  0xb3   : > { %2356 = vsyncadd (%p3226_p6), %s351_s27, 4294966784  ;;  %s1665_s14 = sshll.u32 %s2761_s17, 6  ;;  %s391_s3 = scalar_lea.vmem [#allocation13], %s2761_s17 }
  0xb4   : > { %s2772_s16 = scalar_lea.vmem [#allocation12], %s1665_s14  ;;  %s3193_s6 = scalar_lea.vmem [#allocation15], %s2761_s17 }
  0xb5   : > { %p1666_p5 = scmp.ne.s32.totalorder %s2391_s30, 0 }
  0xb6   : > { %vm424_vm0 = vcmask (!%p1666_p5), 7168   ;;  %v2418_v0 = vmov (!%p1666_p5), 0.0  }
  0xb7   : > { %407 = sbr.rel (%p1666_p5) target bundleno = 199 (0xc7), region = 60  ;;  %408 = vst [vmem:[#allocation2] sm:$0xff] (!%p1666_p5), %v2418_v0  ;;  %409 = vst [vmem:[#allocation2 + $0x8] sm:$0xff] (!%p1666_p5), %v2418_v0 }
  0xb8   : > { %410 = vst [vmem:[#allocation2 + $0x10] sm:$0xff] (!%p1666_p5), %v2418_v0  ;;  %411 = vst [vmem:[#allocation2 + $0x18] sm:$0xff] (!%p1666_p5), %v2418_v0 }
  0xb9   : > { %412 = vst [vmem:[#allocation2 + $0x20] sm:$0xff] (!%p1666_p5), %v2418_v0  ;;  %413 = vst [vmem:[#allocation2 + $0x28] sm:$0xff] (!%p1666_p5), %v2418_v0 }
  0xba   : > { %414 = vst [vmem:[#allocation2 + $0x30] sm:$0xff] (!%p1666_p5), %v2418_v0  ;;  %415 = vst [vmem:[#allocation2 + $0x38] sm:$0xff] (!%p1666_p5), %v2418_v0 }
  0xbb   : > { %416 = vst [vmem:[#allocation2 + $0x40] sm:$0xff] (!%p1666_p5), %v2418_v0  ;;  %417 = vst [vmem:[#allocation2 + $0x48] sm:$0xff] (!%p1666_p5), %v2418_v0 }
  0xbc   : > { %418 = vst [vmem:[#allocation2 + $0x50] sm:$0xff] (!%p1666_p5), %v2418_v0  ;;  %419 = vst [vmem:[#allocation2 + $0x58] sm:$0xff] (!%p1666_p5), %v2418_v0 }
  0xbd   : > { %420 = vst [vmem:[#allocation2 + $0x60] sm:$0xff] (!%p1666_p5), %v2418_v0  ;;  %421 = vst [vmem:[#allocation2 + $0x68] sm:$0xff] (!%p1666_p5), %v2418_v0 }
  0xbe   : > { %422 = vst [vmem:[#allocation2 + $0x70] sm:$0xff] %v2418_v0  ;;  %423 = vst [vmem:[#allocation2 + $0x78] sm:$0xff] %v2418_v0 }
  0xbf   : > { %425 = vst.msk [vmem:[#allocation3] sm:$0xff] %vm424_vm0, %v2418_v0  ;;  %426 = vst.msk [vmem:[#allocation3 + $0x8] sm:$0xff] %vm424_vm0, %v2418_v0 }
  0xc0   : > { %427 = vst.msk [vmem:[#allocation3 + $0x10] sm:$0xff] %vm424_vm0, %v2418_v0  ;;  %428 = vst.msk [vmem:[#allocation3 + $0x18] sm:$0xff] %vm424_vm0, %v2418_v0 }
  0xc1   : > { %429 = vst.msk [vmem:[#allocation3 + $0x20] sm:$0xff] %vm424_vm0, %v2418_v0  ;;  %430 = vst.msk [vmem:[#allocation3 + $0x28] sm:$0xff] %vm424_vm0, %v2418_v0 }
  0xc2   : > { %431 = vst.msk [vmem:[#allocation3 + $0x30] sm:$0xff] %vm424_vm0, %v2418_v0  ;;  %432 = vst.msk [vmem:[#allocation3 + $0x38] sm:$0xff] %vm424_vm0, %v2418_v0 }
  0xc3   : > { %433 = vst.msk [vmem:[#allocation3 + $0x40] sm:$0xff] %vm424_vm0, %v2418_v0  ;;  %434 = vst.msk [vmem:[#allocation3 + $0x48] sm:$0xff] %vm424_vm0, %v2418_v0 }
  0xc4   : > { %435 = vst.msk [vmem:[#allocation3 + $0x50] sm:$0xff] %vm424_vm0, %v2418_v0  ;;  %436 = vst.msk [vmem:[#allocation3 + $0x58] sm:$0xff] %vm424_vm0, %v2418_v0 }
  0xc5   : > { %437 = vst.msk [vmem:[#allocation3 + $0x60] sm:$0xff] %vm424_vm0, %v2418_v0  ;;  %438 = vst.msk [vmem:[#allocation3 + $0x68] sm:$0xff] %vm424_vm0, %v2418_v0 }
  0xc6   : > { %439 = vst.msk [vmem:[#allocation3 + $0x70] sm:$0xff] %vm424_vm0, %v2418_v0  ;;  %440 = vst.msk [vmem:[#allocation3 + $0x78] sm:$0xff] %vm424_vm0, %v2418_v0 }
  0xc7 PF: > { %s1667_s15 = sshll.u32 %s2391_s30, 7  ;;  %v2795_v1 = vld [vmem:[%s2750_s21] sm:$0xff]  ;;  %v2798_v2 = vld [vmem:[%s2750_s21 + $0x10] sm:$0xff]  ;;  %v2811_v13 = vld [vmem:[%s2750_s21 + $0x8] sm:$0xff]  ;;  %vm763_vm1 = vcmask 7168   ;;  %p1677_p9 = scmp.ne.s32.totalorder %s2391_s30, 1 }
  0xc8   : > { %s486_s2 = sshra.s32 %s1667_s15, 3  ;;  %v477_v3 = vunpack.c.l.s8.bf16 %v2795_v1  ;;  %v481_v4 = vunpack.c.l.s8.bf16 %v2798_v2  ;;  %v447_v5 = vunpack.c.2.s8 %v2795_v1  ;;  %v445_v6 = vunpack.c.0.s8 %v2795_v1  ;;  %v444_v35 = vld [vmem:[%s2750_s21 + $0x18] sm:$0xff]  ;;  %v701_v53 = vld [vmem:[#allocation3 + $0x10] sm:$0xff]  ;;  %v699_v54 = vld [vmem:[#allocation3] sm:$0xff]  ;;  %s3233_s19 = sld [smem:[#allocation28_spill]] (!%p1677_p9) }
  0xc9   : > { %s1668_s8 = sshll.u32 %s486_s2, 2  ;;  %v448_v11 = vunpack.c.3.s8 %v2795_v1  ;;  %v446_v12 = vunpack.c.1.s8 %v2795_v1  ;;  %v450_v17 = vunpack.c.1.s8 %v2811_v13  ;;  %v449_v18 = vunpack.c.0.s8 %v2811_v13  ;;  %v702_v59 = vld [vmem:[#allocation3 + $0x18] sm:$0xff]  ;;  %v700_v60 = vld [vmem:[#allocation3 + $0x8] sm:$0xff] }
  0xca   : > { %1824 = vmatprep.mubr.bf16.mxu0 %v477_v3  ;;  %1832 = vmatprep.mubr.bf16.mxu1 %v481_v4  ;;  %s2804_s13 = scalar_lea.vmem [#allocation7], %s1668_s8  ;;  %v463_v9 = vcvt.s32.f32 %v447_v5  ;;  %v461_v10 = vcvt.s32.f32 %v445_v6  ;;  %v452_v22 = vunpack.c.3.s8 %v2811_v13  ;;  %v451_v23 = vunpack.c.2.s8 %v2811_v13 }
  0xcb   : > { %v2051_v7 = vld [vmem:[%s2804_s13] sm:$0xff]   ;;  %v2052_v8 = vld [vmem:[%s2804_s13 + $0x8] sm:$0xff]   ;;  %v2053_v14 = vld [vmem:[%s2804_s13 + $0x10] sm:$0xff]   ;;  %v464_v15 = vcvt.s32.f32 %v448_v11  ;;  %v462_v16 = vcvt.s32.f32 %v446_v12  ;;  %v466_v20 = vcvt.s32.f32 %v450_v17  ;;  %v465_v21 = vcvt.s32.f32 %v449_v18 }
  0xcc   : > { %1808 = vmatprep.subr.bf16.mxu0 %v2051_v7  ;;  %1872 = vmatprep.subr.bf16.mxu1 %v2051_v7  ;;  %v2054_v19 = vld [vmem:[%s2804_s13 + $0x18] sm:$0xff]   ;;  %v2055_v24 = vld [vmem:[%s2804_s13 + $0x20] sm:$0xff]   ;;  %v468_v25 = vcvt.s32.f32 %v452_v22  ;;  %v467_v26 = vcvt.s32.f32 %v451_v23  ;;  %v454_v27 = vunpack.c.1.s8 %v2798_v2  ;;  %v453_v28 = vunpack.c.0.s8 %v2798_v2  ;;  %v2056_v29 = vld [vmem:[%s2804_s13 + $0x28] sm:$0xff]  }
  0xcd   : > { %1809 = vmatpush3.bf16.msra.mxu0 %v2051_v7  ;;  %1880 = vmatpush3.bf16.msra.mxu1 %v2051_v7  ;;  %v456_v32 = vunpack.c.3.s8 %v2798_v2  ;;  %v455_v33 = vunpack.c.2.s8 %v2798_v2  ;;  %v2057_v34 = vld [vmem:[%s2804_s13 + $0x30] sm:$0xff]   ;;  %v458_v38 = vunpack.c.1.s8 %v444_v35  ;;  %v457_v39 = vunpack.c.0.s8 %v444_v35  ;;  %v2058_v40 = vld [vmem:[%s2804_s13 + $0x38] sm:$0xff]  }
  0xce   : > { %1810 = vmatprep.subr.bf16.mxu0 %v2052_v8  ;;  %1873 = vmatprep.subr.bf16.mxu1 %v2052_v8  ;;  %v470_v30 = vcvt.s32.f32 %v454_v27  ;;  %v469_v31 = vcvt.s32.f32 %v453_v28  ;;  %v460_v43 = vunpack.c.3.s8 %v444_v35  ;;  %v459_v44 = vunpack.c.2.s8 %v444_v35  ;;  %v706_v7 = vld [vmem:[#allocation3 + $0x38] sm:$0xff] }
  0xcf   : > { %719 = vadd.xlane.f32.xlu1 %v463_v9  ;;  %715 = vadd.xlane.f32.xlu0 %v461_v10  ;;  %v472_v36 = vcvt.s32.f32 %v456_v32  ;;  %v471_v37 = vcvt.s32.f32 %v455_v33  ;;  %v474_v41 = vcvt.s32.f32 %v458_v38  ;;  %v473_v42 = vcvt.s32.f32 %v457_v39  ;;  %v713_v32 = vld [vmem:[#allocation3 + $0x70] sm:$0xff]  ;;  %v506_v39 = vld [vmem:[#allocation2] sm:$0xff] }
  0xd0   : > { %v476_v45 = vcvt.s32.f32 %v460_v43  ;;  %v475_v46 = vcvt.s32.f32 %v459_v44  ;;  %v478_v47 = vunpack.c.h.s8.bf16 %v2795_v1  ;;  %v482_v48 = vunpack.c.h.s8.bf16 %v2798_v2  ;;  %v704_v1 = vld [vmem:[#allocation3 + $0x28] sm:$0xff]  ;;  %v703_v2 = vld [vmem:[#allocation3 + $0x20] sm:$0xff]  ;;  %v516_v38 = vld [vmem:[#allocation2 + $0x50] sm:$0xff] }
  0xd1   : > { %1811 = vmatpush3.bf16.msra.mxu0 %v2052_v8  ;;  %1881 = vmatpush3.bf16.msra.mxu1 %v2052_v8  ;;  %v479_v49 = vunpack.c.l.s8.bf16 %v2811_v13  ;;  %v483_v50 = vunpack.c.l.s8.bf16 %v444_v35  ;;  %v480_v51 = vunpack.c.h.s8.bf16 %v2811_v13  ;;  %v484_v52 = vunpack.c.h.s8.bf16 %v444_v35  ;;  %v705_v8 = vld [vmem:[#allocation3 + $0x30] sm:$0xff]  ;;  %v708_v13 = vld [vmem:[#allocation3 + $0x48] sm:$0xff]  ;;  %v509_v43 = vld [vmem:[#allocation2 + $0x18] sm:$0xff] }
  0xd2   : > { %1812 = vmatprep.subr.bf16.mxu0 %v2053_v14  ;;  %1874 = vmatprep.subr.bf16.mxu1 %v2053_v14  ;;  %v517_v44 = vld [vmem:[#allocation2 + $0x58] sm:$0xff] }
  0xd3   : > { %721 = vadd.xlane.f32.xlu1 %v464_v15  ;;  %717 = vadd.xlane.f32.xlu0 %v462_v16 }
  0xd5   : > { %1813 = vmatpush3.bf16.msra.mxu0 %v2053_v14  ;;  %1882 = vmatpush3.bf16.msra.mxu1 %v2053_v14  ;;  %v707_v14 = vld [vmem:[#allocation3 + $0x40] sm:$0xff] }
  0xd6   : > { %1814 = vmatprep.subr.bf16.mxu0 %v2054_v19  ;;  %1875 = vmatprep.subr.bf16.mxu1 %v2054_v19 }
  0xd7   : > { %725 = vadd.xlane.f32.xlu1 %v466_v20  ;;  %723 = vadd.xlane.f32.xlu0 %v465_v21  ;;  %v709_v20 = vld [vmem:[#allocation3 + $0x50] sm:$0xff] }
  0xd9   : > { %1815 = vmatpush3.bf16.msra.mxu0 %v2054_v19  ;;  %1883 = vmatpush3.bf16.msra.mxu1 %v2054_v19  ;;  %v710_v19 = vld [vmem:[#allocation3 + $0x58] sm:$0xff] }
  0xda   : > { %1816 = vmatprep.subr.bf16.mxu0 %v2055_v24  ;;  %1876 = vmatprep.subr.bf16.mxu1 %v2055_v24 }
  0xdb   : > { %729 = vadd.xlane.f32.xlu1 %v468_v25  ;;  %727 = vadd.xlane.f32.xlu0 %v467_v26  ;;  %v712_v25 = vld [vmem:[#allocation3 + $0x68] sm:$0xff]  ;;  %v711_v26 = vld [vmem:[#allocation3 + $0x60] sm:$0xff] }
  0xdd   : > { %1817 = vmatpush3.bf16.msra.mxu0 %v2055_v24  ;;  %1884 = vmatpush3.bf16.msra.mxu1 %v2055_v24 }
  0xde   : > { %1818 = vmatprep.subr.bf16.mxu0 %v2056_v29  ;;  %1877 = vmatprep.subr.bf16.mxu1 %v2056_v29 }
  0xdf   : > { %733 = vadd.xlane.f32.xlu1 %v470_v30  ;;  %731 = vadd.xlane.f32.xlu0 %v469_v31  ;;  %v714_v31 = vld [vmem:[#allocation3 + $0x78] sm:$0xff] }
  0xe1   : > { %1819 = vmatpush3.bf16.msra.mxu0 %v2056_v29  ;;  %1885 = vmatpush3.bf16.msra.mxu1 %v2056_v29 }
  0xe2   : > { %1820 = vmatprep.subr.bf16.mxu0 %v2057_v34  ;;  %1878 = vmatprep.subr.bf16.mxu1 %v2057_v34 }
  0xe3   : > { %737 = vadd.xlane.f32.xlu1 %v472_v36  ;;  %735 = vadd.xlane.f32.xlu0 %v471_v37  ;;  %v508_v37 = vld [vmem:[#allocation2 + $0x10] sm:$0xff] }
  0xe5   : > { %1821 = vmatpush3.bf16.msra.mxu0 %v2057_v34  ;;  %1886 = vmatpush3.bf16.msra.mxu1 %v2057_v34 }
  0xe6   : > { %1822 = vmatprep.subr.bf16.mxu0 %v2058_v40  ;;  %1879 = vmatprep.subr.bf16.mxu1 %v2058_v40 }
  0xe7   : > { %741 = vadd.xlane.f32.xlu1 %v474_v41  ;;  %739 = vadd.xlane.f32.xlu0 %v473_v42 }
  0xe9   : > { %1823 = vmatpush3.bf16.msra.mxu0 %v2058_v40  ;;  %1887 = vmatpush3.bf16.msra.mxu1 %v2058_v40  ;;  %v514_v40 = vld [vmem:[#allocation2 + $0x40] sm:$0xff] }
  0xeb   : > { %745 = vadd.xlane.f32.xlu1 %v476_v45  ;;  %743 = vadd.xlane.f32.xlu0 %v475_v46 }
  0xec   : > { %1825 = vmatmul.mubr.bf16.vlgmr.msra.gmra.mrb[0].mxu0 %v478_v47  ;;  %1833 = vmatmul.mubr.bf16.vlgmr.msra.gmra.mrb[0].mxu1 %v482_v48 }
  0xed   : > { %1828 = vmatprep.mubr.bf16.mxu0 %v479_v49  ;;  %1836 = vmatprep.mubr.bf16.mxu1 %v483_v50  ;;  %v507_v49 = vld [vmem:[#allocation2 + $0x8] sm:$0xff] }
  0xee   : > { %v515_v50 = vld [vmem:[#allocation2 + $0x48] sm:$0xff] }
  0xf4   : > { %1829 = vmatmul.mubr.bf16.gmra.mrb[4].mxu0 %v480_v51  ;;  %1837 = vmatmul.mubr.bf16.gmra.mrb[4].mxu1 %v484_v52 }
 0x15c   : > { %v720_v55 = vpop.xlane.xlu1 %719  ;;  %v716_v56 = vpop.xlane.xlu0 %715 }
 0x15d   : > { %v749_v57 = vadd.f32 %v720_v55, %v701_v53  ;;  %v747_v58 = vadd.f32 %v716_v56, %v699_v54 }
 0x15f   : > { %766 = vst.msk [vmem:[#allocation3 + $0x10] sm:$0xff] %vm763_vm1, %v749_v57  ;;  %764 = vst.msk [vmem:[#allocation3] sm:$0xff] %vm763_vm1, %v747_v58 }
 0x160   : > { %v722_v61 = vpop.xlane.xlu1 %721  ;;  %v718_v62 = vpop.xlane.xlu0 %717 }
 0x161   : > { %v750_v63 = vadd.f32 %v722_v61, %v702_v59  ;;  %v748_v0 = vadd.f32 %v718_v62, %v700_v60  ;;  %v512_v61 = vld [vmem:[#allocation2 + $0x30] sm:$0xff] }
 0x162   : > { %v520_v62 = vld [vmem:[#allocation2 + $0x70] sm:$0xff] }
 0x163   : > { %767 = vst.msk [vmem:[#allocation3 + $0x18] sm:$0xff] %vm763_vm1, %v750_v63  ;;  %765 = vst.msk [vmem:[#allocation3 + $0x8] sm:$0xff] %vm763_vm1, %v748_v0  ;;  %v510_v63 = vld [vmem:[#allocation2 + $0x20] sm:$0xff] }
 0x164   : > { %v726_v3 = vpop.xlane.xlu1 %725  ;;  %v724_v4 = vpop.xlane.xlu0 %723  ;;  %v518_v0 = vld [vmem:[#allocation2 + $0x60] sm:$0xff] }
 0x165   : > { %v752_v5 = vadd.f32 %v726_v3, %v704_v1  ;;  %v751_v6 = vadd.f32 %v724_v4, %v703_v2  ;;  %v513_v3 = vld [vmem:[#allocation2 + $0x38] sm:$0xff] }
 0x166   : > { %v521_v4 = vld [vmem:[#allocation2 + $0x78] sm:$0xff] }
 0x167   : > { %769 = vst.msk [vmem:[#allocation3 + $0x28] sm:$0xff] %vm763_vm1, %v752_v5  ;;  %768 = vst.msk [vmem:[#allocation3 + $0x20] sm:$0xff] %vm763_vm1, %v751_v6 }
 0x168   : > { %v730_v9 = vpop.xlane.xlu1 %729  ;;  %v728_v10 = vpop.xlane.xlu0 %727 }
 0x169   : > { %v754_v11 = vadd.f32 %v730_v9, %v706_v7  ;;  %v753_v12 = vadd.f32 %v728_v10, %v705_v8  ;;  %v511_v9 = vld [vmem:[#allocation2 + $0x28] sm:$0xff] }
 0x16a   : > { %v519_v10 = vld [vmem:[#allocation2 + $0x68] sm:$0xff] }
 0x16b   : > { %771 = vst.msk [vmem:[#allocation3 + $0x38] sm:$0xff] %vm763_vm1, %v754_v11  ;;  %770 = vst.msk [vmem:[#allocation3 + $0x30] sm:$0xff] %vm763_vm1, %v753_v12 }
 0x16c   : > { %v734_v15 = vpop.xlane.xlu1 %733  ;;  %v732_v16 = vpop.xlane.xlu0 %731 }
 0x16d   : > { %v756_v17 = vadd.f32 %v734_v15, %v708_v13  ;;  %v755_v18 = vadd.f32 %v732_v16, %v707_v14 }
 0x16f   : > { %773 = vst.msk [vmem:[#allocation3 + $0x48] sm:$0xff] %vm763_vm1, %v756_v17  ;;  %772 = vst.msk [vmem:[#allocation3 + $0x40] sm:$0xff] %vm763_vm1, %v755_v18 }
 0x170   : > { %v738_v21 = vpop.xlane.xlu1 %737  ;;  %v736_v22 = vpop.xlane.xlu0 %735 }
 0x171   : > { %v758_v23 = vadd.f32 %v738_v21, %v710_v19  ;;  %v757_v24 = vadd.f32 %v736_v22, %v709_v20  ;;  %v786_v21 = vld [vmem:[#allocation3 + $0x10] sm:$0xff] (!%p1677_p9)  ;;  %v784_v22 = vld [vmem:[#allocation3] sm:$0xff] (!%p1677_p9) }
 0x173   : > { %775 = vst.msk [vmem:[#allocation3 + $0x58] sm:$0xff] %vm763_vm1, %v758_v23  ;;  %774 = vst.msk [vmem:[#allocation3 + $0x50] sm:$0xff] %vm763_vm1, %v757_v24  ;;  %v787_v23 = vld [vmem:[#allocation3 + $0x18] sm:$0xff] (!%p1677_p9)  ;;  %v2419_v24 = vmov (!%p1677_p9), 0  }
 0x174   : > { %v742_v27 = vpop.xlane.xlu1 %741  ;;  %v740_v28 = vpop.xlane.xlu0 %739  ;;  %2060 = vset.pattern.permute.xlu1 (!%p1677_p9), %v2419_v24  ;;  %2059 = vset.pattern.permute.xlu0 (!%p1677_p9), %v2419_v24 }
 0x175   : > { %v760_v29 = vadd.f32 %v742_v27, %v712_v25  ;;  %v759_v30 = vadd.f32 %v740_v28, %v711_v26  ;;  %v802_v25 = vmax.f32 (!%p1677_p9), %v786_v21, 1.0  ;;  %v800_v26 = vmax.f32 (!%p1677_p9), %v784_v22, 1.0  ;;  %v785_v28 = vld [vmem:[#allocation3 + $0x8] sm:$0xff] (!%p1677_p9) }
 0x176   : > { %v803_v27 = vmax.f32 (!%p1677_p9), %v787_v23, 1.0 }
 0x177   : > { %777 = vst.msk [vmem:[#allocation3 + $0x68] sm:$0xff] %vm763_vm1, %v760_v29  ;;  %776 = vst.msk [vmem:[#allocation3 + $0x60] sm:$0xff] %vm763_vm1, %v759_v30  ;;  %v801_v29 = vmax.f32 (!%p1677_p9), %v785_v28, 1.0  ;;  %v789_v30 = vld [vmem:[#allocation3 + $0x28] sm:$0xff] (!%p1677_p9)  ;;  %2069 = vrsqrt.f32 (!%p1677_p9), %v802_v25 }
 0x178   : > { %v746_v33 = vpop.xlane.xlu1 %745  ;;  %v744_v34 = vpop.xlane.xlu0 %743  ;;  %2071 = vrsqrt.f32 (!%p1677_p9), %v800_v26 }
 0x179   : > { %v762_v35 = vadd.f32 %v746_v33, %v714_v31  ;;  %v761_v36 = vadd.f32 %v744_v34, %v713_v32  ;;  %v788_v31 = vld [vmem:[#allocation3 + $0x20] sm:$0xff] (!%p1677_p9)  ;;  %2073 = vrsqrt.f32 (!%p1677_p9), %v803_v27  ;;  %v805_v32 = vmax.f32 (!%p1677_p9), %v789_v30, 1.0  ;;  %v791_v33 = vld [vmem:[#allocation3 + $0x38] sm:$0xff] (!%p1677_p9)  ;;  %v790_v34 = vld [vmem:[#allocation3 + $0x30] sm:$0xff] (!%p1677_p9) }
 0x17a   : > { %2075 = vrsqrt.f32 (!%p1677_p9), %v801_v29 }
 0x17b   : > { %779 = vst.msk [vmem:[#allocation3 + $0x78] sm:$0xff] %vm763_vm1, %v762_v35  ;;  %778 = vst.msk [vmem:[#allocation3 + $0x70] sm:$0xff] %vm763_vm1, %v761_v36  ;;  %v804_v35 = vmax.f32 (!%p1677_p9), %v788_v31, 1.0  ;;  %v2061_v36 = vld [vmem:[#allocation9] sm:$0xff] (!%p1677_p9)   ;;  %2077 = vrsqrt.f32 (!%p1677_p9), %v805_v32 }
 0x17c   : > { %1840 = vmatprep.subr.bf16.mxu0 (!%p1677_p9), %v2061_v36  ;;  %1888 = vmatprep.subr.bf16.mxu1 (!%p1677_p9), %v2061_v36 }
 0x17d   : > { %1841 = vmatpush3.bf16.msra.mxu0 (!%p1677_p9), %v2061_v36  ;;  %1896 = vmatpush3.bf16.msra.mxu1 (!%p1677_p9), %v2061_v36  ;;  %2079 = vrsqrt.f32 (!%p1677_p9), %v804_v35 }
 0x1bf   : > { %v1826_v41 = vpop.f32.mrb[0].mxu0  ;;  %v1834_v42 = vpop.f32.mrb[0].mxu1 }
 0x1c0   : > { %v669_v45 = vadd.f32 %v1826_v41, %v508_v37  ;;  %v677_v46 = vadd.f32 %v1834_v42, %v516_v38  ;;  %v604_v47 = vpop.f32.mrb[1].mxu0  ;;  %v636_v48 = vpop.f32.mrb[1].mxu1  ;;  %v2062_v37 = vld [vmem:[#allocation9 + $0x8] sm:$0xff] (!%p1677_p9)   ;;  %v807_v38 = vmax.f32 (!%p1677_p9), %v791_v33, 1.0  ;;  %v2063_v41 = vld [vmem:[#allocation9 + $0x10] sm:$0xff] (!%p1677_p9)   ;;  %v792_v42 = vld [vmem:[#allocation3 + $0x40] sm:$0xff] (!%p1677_p9) }
 0x1c1   : > { %v667_v51 = vadd.f32 %v604_v47, %v506_v39  ;;  %v675_v52 = vadd.f32 %v636_v48, %v514_v40  ;;  %v1827_v53 = vpop.f32.mrb[2].mxu0  ;;  %v1835_v54 = vpop.f32.mrb[2].mxu1  ;;  %v793_v39 = vld [vmem:[#allocation3 + $0x48] sm:$0xff] (!%p1677_p9)  ;;  %v806_v40 = vmax.f32 (!%p1677_p9), %v790_v34, 1.0  ;;  %1842 = vmatprep.subr.bf16.mxu0 (!%p1677_p9), %v2062_v37  ;;  %1889 = vmatprep.subr.bf16.mxu1 (!%p1677_p9), %v2062_v37  ;;  %v795_v47 = vld [vmem:[#allocation3 + $0x58] sm:$0xff] (!%p1677_p9) }
 0x1c2   : > { %685 = vst [vmem:[#allocation2 + $0x10] sm:$0xff] %v669_v45  ;;  %693 = vst [vmem:[#allocation2 + $0x50] sm:$0xff] %v677_v46  ;;  %v670_v55 = vadd.f32 %v1827_v53, %v509_v43  ;;  %v678_v56 = vadd.f32 %v1835_v54, %v517_v44  ;;  %v607_v57 = vpop.f32.mrb[3].mxu0  ;;  %v639_v58 = vpop.f32.mrb[3].mxu1  ;;  %2081 = vrsqrt.f32 (!%p1677_p9), %v807_v38  ;;  %v809_v44 = vmax.f32 (!%p1677_p9), %v793_v39, 1.0  ;;  %1843 = vmatpush3.bf16.msra.mxu0 (!%p1677_p9), %v2062_v37  ;;  %v2064_v48 = vld [vmem:[#allocation9 + $0x18] sm:$0xff] (!%p1677_p9)  }
 0x1c3   : > { %683 = vst [vmem:[#allocation2] sm:$0xff] %v667_v51  ;;  %691 = vst [vmem:[#allocation2 + $0x40] sm:$0xff] %v675_v52  ;;  %v668_v59 = vadd.f32 %v607_v57, %v507_v49  ;;  %v676_v60 = vadd.f32 %v639_v58, %v515_v50  ;;  %v2070_v43 = vpop.eup (!%p1677_p9), %2069  ;;  %1897 = vmatpush3.bf16.msra.mxu1 (!%p1677_p9), %v2062_v37  ;;  %2083 = vrsqrt.f32 (!%p1677_p9), %v806_v40  ;;  %v808_v46 = vmax.f32 (!%p1677_p9), %v792_v42, 1.0  ;;  %v794_v50 = vld [vmem:[#allocation3 + $0x50] sm:$0xff] (!%p1677_p9)  ;;  %v797_v54 = vld [vmem:[#allocation3 + $0x68] sm:$0xff] (!%p1677_p9) }
 0x1c4   : > { %686 = vst [vmem:[#allocation2 + $0x18] sm:$0xff] %v670_v55  ;;  %694 = vst [vmem:[#allocation2 + $0x58] sm:$0xff] %v678_v56  ;;  %v2072_v45 = vpop.eup (!%p1677_p9), %2071  ;;  %860 = vperm.xlu1 (!%p1677_p9), %2060, %v2070_v43   ;;  %1844 = vmatprep.subr.bf16.mxu0 (!%p1677_p9), %v2063_v41  ;;  %2085 = vrsqrt.f32 (!%p1677_p9), %v809_v44  ;;  %v811_v52 = vmax.f32 (!%p1677_p9), %v795_v47, 1.0  ;;  %v810_v53 = vmax.f32 (!%p1677_p9), %v794_v50, 1.0  ;;  %v2065_v55 = vld [vmem:[#allocation9 + $0x20] sm:$0xff] (!%p1677_p9)  }
 0x1c5   : > { %684 = vst [vmem:[#allocation2 + $0x8] sm:$0xff] %v668_v59  ;;  %692 = vst [vmem:[#allocation2 + $0x48] sm:$0xff] %v676_v60  ;;  %v2074_v49 = vpop.eup (!%p1677_p9), %2073  ;;  %850 = vperm.xlu0 (!%p1677_p9), %2059, %v2072_v45   ;;  %1890 = vmatprep.subr.bf16.mxu1 (!%p1677_p9), %v2063_v41  ;;  %2087 = vrsqrt.f32 (!%p1677_p9), %v808_v46  ;;  %v796_v57 = vld [vmem:[#allocation3 + $0x60] sm:$0xff] (!%p1677_p9)  ;;  %v813_v59 = vmax.f32 (!%p1677_p9), %v797_v54, 1.0 }
 0x1c6   : > { %v2076_v51 = vpop.eup (!%p1677_p9), %2075  ;;  %1845 = vmatpush3.bf16.msra.mxu0 (!%p1677_p9), %v2063_v41  ;;  %2089 = vrsqrt.f32 (!%p1677_p9), %v811_v52  ;;  %v812_v60 = vmax.f32 (!%p1677_p9), %v796_v57, 1.0 }
 0x1c7   : > { %v1830_v1 = vpop.f32.mrb[4].mxu0  ;;  %v1838_v2 = vpop.f32.mrb[4].mxu1  ;;  %783 = sbr.rel (%p1677_p9) target bundleno = 855 (0x357), region = 64  ;;  %1898 = vmatpush3.bf16.msra.mxu1 (!%p1677_p9), %v2063_v41  ;;  %1846 = vmatprep.subr.bf16.mxu0 (!%p1677_p9), %v2064_v48  ;;  %2091 = vrsqrt.f32 (!%p1677_p9), %v810_v53 }
 0x1c8   : > { %v673_v5 = vadd.f32 %v1830_v1, %v512_v61  ;;  %v681_v6 = vadd.f32 %v1838_v2, %v520_v62  ;;  %v620_v7 = vpop.f32.mrb[5].mxu0  ;;  %v652_v8 = vpop.f32.mrb[5].mxu1  ;;  %865 = vperm.xlu1 (!%p1677_p9), %2060, %v2074_v49   ;;  %1891 = vmatprep.subr.bf16.mxu1 (!%p1677_p9), %v2064_v48  ;;  %v799_v61 = vld [vmem:[#allocation3 + $0x78] sm:$0xff] (!%p1677_p9)  ;;  %v2066_v62 = vld [vmem:[#allocation9 + $0x28] sm:$0xff] (!%p1677_p9)   ;;  %2093 = vrsqrt.f32 (!%p1677_p9), %v813_v59 }
 0x1c9   : > { %v671_v11 = vadd.f32 %v620_v7, %v510_v63  ;;  %v679_v12 = vadd.f32 %v652_v8, %v518_v0  ;;  %v1831_v13 = vpop.f32.mrb[6].mxu0  ;;  %v1839_v14 = vpop.f32.mrb[6].mxu1  ;;  %855 = vperm.xlu0 (!%p1677_p9), %2059, %v2076_v51   ;;  %v798_v0 = vld [vmem:[#allocation3 + $0x70] sm:$0xff] (!%p1677_p9)  ;;  %v815_v2 = vmax.f32 (!%p1677_p9), %v799_v61, 1.0  ;;  %2095 = vrsqrt.f32 (!%p1677_p9), %v812_v60  ;;  %v2068_v7 = vld [vmem:[#allocation9 + $0x38] sm:$0xff] (!%p1677_p9)  }
 0x1ca   : > { %689 = vst [vmem:[#allocation2 + $0x30] sm:$0xff] %v673_v5  ;;  %697 = vst [vmem:[#allocation2 + $0x70] sm:$0xff] %v681_v6  ;;  %v674_v15 = vadd.f32 %v1831_v13, %v513_v3  ;;  %v682_v16 = vadd.f32 %v1839_v14, %v521_v4  ;;  %v623_v17 = vpop.f32.mrb[7].mxu0  ;;  %v655_v18 = vpop.f32.mrb[7].mxu1  ;;  %1847 = vmatpush3.bf16.msra.mxu0 (!%p1677_p9), %v2064_v48  ;;  %v814_v3 = vmax.f32 (!%p1677_p9), %v798_v0, 1.0  ;;  %v2067_v4 = vld [vmem:[#allocation9 + $0x30] sm:$0xff] (!%p1677_p9)  }
 0x1cb   : > { %687 = vst [vmem:[#allocation2 + $0x20] sm:$0xff] %v671_v11  ;;  %695 = vst [vmem:[#allocation2 + $0x60] sm:$0xff] %v679_v12  ;;  %v672_v19 = vadd.f32 %v623_v17, %v511_v9  ;;  %v680_v20 = vadd.f32 %v655_v18, %v519_v10  ;;  %v2078_v56 = vpop.eup (!%p1677_p9), %2077  ;;  %1899 = vmatpush3.bf16.msra.mxu1 (!%p1677_p9), %v2064_v48  ;;  %1848 = vmatprep.subr.bf16.mxu0 (!%p1677_p9), %v2065_v55  ;;  %2097 = vrsqrt.f32 (!%p1677_p9), %v815_v2  ;;  %v835_v17 = vld [vmem:[#allocation2 + $0x18] sm:$0xff] (!%p1677_p9)  ;;  %v832_v18 = vld [vmem:[#allocation2] sm:$0xff] (!%p1677_p9) }
 0x1cc   : > { %690 = vst [vmem:[#allocation2 + $0x38] sm:$0xff] %v674_v15  ;;  %698 = vst [vmem:[#allocation2 + $0x78] sm:$0xff] %v682_v16  ;;  %v2080_v58 = vpop.eup (!%p1677_p9), %2079  ;;  %875 = vperm.xlu1 (!%p1677_p9), %2060, %v2078_v56   ;;  %1892 = vmatprep.subr.bf16.mxu1 (!%p1677_p9), %v2065_v55  ;;  %2099 = vrsqrt.f32 (!%p1677_p9), %v814_v3  ;;  %v834_v16 = vld [vmem:[#allocation2 + $0x10] sm:$0xff] (!%p1677_p9)  ;;  %v841_v42 = vld [vmem:[#allocation2 + $0x48] sm:$0xff] (!%p1677_p9) }
 0x1cd   : > { %688 = vst [vmem:[#allocation2 + $0x28] sm:$0xff] %v672_v19  ;;  %696 = vst [vmem:[#allocation2 + $0x68] sm:$0xff] %v680_v20  ;;  %v2082_v63 = vpop.eup (!%p1677_p9), %2081  ;;  %870 = vperm.xlu0 (!%p1677_p9), %2059, %v2080_v58   ;;  %v833_v19 = vld [vmem:[#allocation2 + $0x8] sm:$0xff] (!%p1677_p9)  ;;  %v840_v43 = vld [vmem:[#allocation2 + $0x40] sm:$0xff] (!%p1677_p9) }
 0x1ce   : > { %v2084_v1 = vpop.eup %2083  ;;  %1849 = vmatpush3.bf16.msra.mxu0 %v2065_v55  ;;  %v843_v49 = vld [vmem:[#allocation2 + $0x58] sm:$0xff]  ;;  %v842_v50 = vld [vmem:[#allocation2 + $0x50] sm:$0xff] }
 0x1cf   : > { %1900 = vmatpush3.bf16.msra.mxu1 %v2065_v55  ;;  %1850 = vmatprep.subr.bf16.mxu0 %v2066_v62  ;;  %v2086_v5 = vpop.eup %2085 }
 0x1d0   : > { %885 = vperm.xlu1 %2060, %v2082_v63   ;;  %1893 = vmatprep.subr.bf16.mxu1 %v2066_v62  ;;  %v2088_v6 = vpop.eup %2087 }
 0x1d1   : > { %880 = vperm.xlu0 %2059, %v2084_v1   ;;  %v2090_v8 = vpop.eup %2089  ;;  %v838_v36 = vld [vmem:[#allocation2 + $0x30] sm:$0xff] }
 0x1d2   : > { %1851 = vmatpush3.bf16.msra.mxu0 %v2066_v62  ;;  %v2092_v9 = vpop.eup %2091  ;;  %v836_v29 = vld [vmem:[#allocation2 + $0x20] sm:$0xff]  ;;  %v846_v0 = vld [vmem:[#allocation2 + $0x70] sm:$0xff] }
 0x1d3   : > { %1901 = vmatpush3.bf16.msra.mxu1 %v2066_v62  ;;  %1852 = vmatprep.subr.bf16.mxu0 %v2067_v4  ;;  %v2094_v10 = vpop.eup %2093  ;;  %v839_v35 = vld [vmem:[#allocation2 + $0x38] sm:$0xff]  ;;  %v844_v57 = vld [vmem:[#allocation2 + $0x60] sm:$0xff] }
 0x1d4   : > { %895 = vperm.xlu1 %2060, %v2086_v5   ;;  %1894 = vmatprep.subr.bf16.mxu1 %v2067_v4  ;;  %v2096_v11 = vpop.eup %2095  ;;  %v837_v27 = vld [vmem:[#allocation2 + $0x28] sm:$0xff]  ;;  %v847_v63 = vld [vmem:[#allocation2 + $0x78] sm:$0xff] }
 0x1d5   : > { %890 = vperm.xlu0 %2059, %v2088_v6   ;;  %v2098_v12 = vpop.eup %2097  ;;  %v845_v56 = vld [vmem:[#allocation2 + $0x68] sm:$0xff] }
 0x1d6   : > { %1853 = vmatpush3.bf16.msra.mxu0 %v2067_v4  ;;  %v2100_v13 = vpop.eup %2099 }
 0x1d7   : > { %1902 = vmatpush3.bf16.msra.mxu1 %v2067_v4  ;;  %1854 = vmatprep.subr.bf16.mxu0 %v2068_v7 }
 0x1d8   : > { %905 = vperm.xlu1 %2060, %v2090_v8   ;;  %1895 = vmatprep.subr.bf16.mxu1 %v2068_v7 }
 0x1d9   : > { %900 = vperm.xlu0 %2059, %v2092_v9   ;;  %v1121_v9 = vld [vmem:[%s2765_s7 + $0x8] sm:$0xff] }
 0x1da   : > { %1855 = vmatpush3.bf16.msra.mxu0 %v2068_v7  ;;  %vm1125_vm3 = vnez %v1121_v9 }
 0x1db   : > { %1903 = vmatpush3.bf16.msra.mxu1 %v2068_v7  ;;  %v1120_v7 = vld [vmem:[%s2765_s7] sm:$0xff] }
 0x1dc   : > { %915 = vperm.xlu1 %2060, %v2094_v10   ;;  %vm1124_vm2 = vnez %v1120_v7 }
 0x1dd   : > { %910 = vperm.xlu0 %2059, %v2096_v11   ;;  %v1144_v8 = vsel %vm1124_vm2, 16843009, %v2419_v24 }
 0x1de   : > { %v1150_v10 = vunpack.c.2.s8 %v1144_v8  ;;  %v1148_v11 = vunpack.c.0.s8 %v1144_v8 }
 0x1e0   : > { %925 = vperm.xlu1 %2060, %v2098_v12   ;;  %v1168_v12 = vpack.c.b16 %v1150_v10, %v1150_v10 }
 0x1e1   : > { %920 = vperm.xlu0 %2059, %v2100_v13   ;;  %v1151_v13 = vunpack.c.3.s8 %v1144_v8 }
 0x243   : > { %v861_v14 = vpop.permute.xlu1 %860 }
 0x244   : > { %v851_v15 = vpop.permute.xlu0 %850  ;;  %v930_v21 = vmul.f32 %v861_v14, %v834_v16  ;;  %v1122_v14 = vld [vmem:[%s2765_s7 + $0x10] sm:$0xff]  ;;  %v1149_v16 = vunpack.c.1.s8 %v1144_v8 }
 0x245   : > { %v928_v25 = vmul.f32 %v851_v15, %v832_v18  ;;  %v1164_v15 = vpack.c.b16 %v1148_v11, %v1148_v11  ;;  %vm1126_vm4 = vnez %v1122_v14  ;;  %v1169_v18 = vpack.c.b8 %v1168_v12, %v1168_v12 }
 0x247   : > { %v866_v20 = vpop.permute.xlu1 %865  ;;  %vm1198_vm5 = vnez %v1169_v18 }
 0x248   : > { %v931_v22 = vmul.f32 %v866_v20, %v835_v17  ;;  %v856_v23 = vpop.permute.xlu0 %855  ;;  %v1145_v17 = vsel %vm1125_vm3, 16843009, %v2419_v24 }
 0x249   : > { %v929_v26 = vmul.f32 %v856_v23, %v833_v19  ;;  %v1170_v19 = vpack.c.b16 %v1151_v13, %v1151_v13  ;;  %v1154_v20 = vunpack.c.2.s8 %v1145_v17  ;;  %v1166_v23 = vpack.c.b16 %v1149_v16, %v1149_v16 }
 0x24a   : > { %v945_v28 = vpack.c.bf16 %v931_v22, %v930_v21  ;;  %v1152_v21 = vunpack.c.0.s8 %v1145_v17  ;;  %v1165_v22 = vpack.c.b8 %v1164_v15, %v1164_v15 }
 0x24b   : > { %v876_v30 = vpop.permute.xlu1 %875  ;;  %v944_v31 = vpack.c.bf16 %v929_v26, %v928_v25  ;;  %v1155_v25 = vunpack.c.3.s8 %v1145_v17  ;;  %v1153_v26 = vunpack.c.1.s8 %v1145_v17 }
 0x24c   : > { %v933_v32 = vmul.f32 %v876_v30, %v837_v27  ;;  %v871_v33 = vpop.permute.xlu0 %870  ;;  %v1146_v27 = vsel %vm1126_vm4, 16843009, %v2419_v24  ;;  %v1172_v30 = vpack.c.b16 %v1152_v21, %v1152_v21  ;;  %vm1196_vm6 = vnez %v1165_v22 }
 0x24d   : > { %v932_v34 = vmul.f32 %v871_v33, %v836_v29  ;;  %1856 = vmatprep.mubr.bf16.mxu0 %v944_v31  ;;  %v1176_v29 = vpack.c.b16 %v1154_v20, %v1154_v20  ;;  %v1123_v31 = vld [vmem:[%s2765_s7 + $0x18] sm:$0xff]  ;;  %v1178_v33 = vpack.c.b16 %v1155_v25, %v1155_v25 }
 0x24e   : > { %1857 = vmatmul.mubr.bf16.vlgmr.msra.gmra.mrb[0].mxu0 %v945_v28  ;;  %v1171_v28 = vpack.c.b8 %v1170_v19, %v1170_v19  ;;  %vm1127_vm7 = vnez %v1123_v31 }
 0x24f   : > { %v946_v37 = vpack.c.bf16 %v933_v32, %v932_v34  ;;  %v886_v38 = vpop.permute.xlu1 %885  ;;  %v1167_v32 = vpack.c.b8 %v1166_v23, %v1166_v23  ;;  %v1158_v34 = vunpack.c.2.s8 %v1146_v27 }
 0x250   : > { %v935_v39 = vmul.f32 %v886_v38, %v839_v35  ;;  %v881_v40 = vpop.permute.xlu0 %880  ;;  %v1174_v35 = vpack.c.b16 %v1153_v26, %v1153_v26  ;;  %v1159_v38 = vunpack.c.3.s8 %v1146_v27  ;;  %vm1199_vm8 = vnez %v1171_v28 }
 0x251   : > { %v934_v41 = vmul.f32 %v881_v40, %v838_v36  ;;  %1860 = vmatprep.mubr.bf16.mxu0 %v946_v37  ;;  %v1156_v36 = vunpack.c.0.s8 %v1146_v27  ;;  %v1214_v37 = vsel %vm1198_vm5, 16843009, %v2419_v24  ;;  %v1177_v40 = vpack.c.b8 %v1176_v29, %v1176_v29 }
 0x252   : > { %vm1197_vm9 = vnez %v1167_v32 }
 0x253   : > { %v947_v44 = vpack.c.bf16 %v935_v39, %v934_v41  ;;  %v896_v45 = vpop.permute.xlu1 %895  ;;  %v1212_v39 = vsel %vm1196_vm6, 16843009, %v2419_v24  ;;  %v1173_v41 = vpack.c.b8 %v1172_v30, %v1172_v30  ;;  %vm1202_vm10 = vnez %v1177_v40 }
 0x254   : > { %v937_v46 = vmul.f32 %v896_v45, %v841_v42  ;;  %v891_v47 = vpop.permute.xlu0 %890  ;;  %v1179_v42 = vpack.c.b8 %v1178_v33, %v1178_v33  ;;  %v1175_v45 = vpack.c.b8 %v1174_v35, %v1174_v35 }
 0x255   : > { %v936_v48 = vmul.f32 %v891_v47, %v840_v43  ;;  %v1184_v43 = vpack.c.b16 %v1158_v34, %v1158_v34  ;;  %v1147_v47 = vsel %vm1127_vm7, 16843009, %v2419_v24  ;;  %vm1200_vm11 = vnez %v1173_v41 }
 0x256   : > { %1861 = vmatmul.mubr.bf16.gmra.mrb[4].mxu0 %v947_v44  ;;  %v1157_v44 = vunpack.c.1.s8 %v1146_v27  ;;  %vm1203_vm12 = vnez %v1179_v42  ;;  %vm1201_vm13 = vnez %v1175_v45  ;;  %v1160_v7 = vunpack.c.0.s8 %v1147_v47 }
 0x257   : > { %v906_v51 = vpop.permute.xlu1 %905  ;;  %v948_v52 = vpack.c.bf16 %v937_v46, %v936_v48  ;;  %v1180_v46 = vpack.c.b16 %v1156_v36, %v1156_v36  ;;  %v1228_v48 = vunpack.c.0.s8 %v1212_v39  ;;  %v1163_v8 = vunpack.c.3.s8 %v1147_v47 }
 0x258   : > { %v939_v53 = vmul.f32 %v906_v51, %v843_v49  ;;  %v901_v54 = vpop.permute.xlu0 %900  ;;  %v1215_v49 = vsel %vm1199_vm8, 16843009, %v2419_v24  ;;  %v1230_v51 = vunpack.c.0.s8 %v1214_v37  ;;  %v1161_v11 = vunpack.c.1.s8 %v1147_v47 }
 0x259   : > { %v938_v55 = vmul.f32 %v901_v54, %v842_v50  ;;  %1864 = vmatprep.mubr.bf16.mxu1 %v948_v52  ;;  %v1186_v50 = vpack.c.b16 %v1159_v38, %v1159_v38  ;;  %v1213_v52 = vsel %vm1197_vm9, 16843009, %v2419_v24  ;;  %v1182_v54 = vpack.c.b16 %v1157_v44, %v1157_v44 }
 0x25a   : > { %vm2863_vm14 = vcmp.ne.s32.totalorder %v1228_v48, 0  ;;  %vm2867_vm15 = vcmp.ne.s32.totalorder %v1230_v51, 0  ;;  %v1188_v26 = vpack.c.b16 %v1160_v7, %v1160_v7  ;;  %v1194_v27 = vpack.c.b16 %v1163_v8, %v1163_v8 }
 0x25b   : > { %v949_v58 = vpack.c.bf16 %v939_v53, %v938_v55  ;;  %v916_v59 = vpop.permute.xlu1 %915  ;;  %v1185_v53 = vpack.c.b8 %v1184_v43, %v1184_v43  ;;  %v1162_v55 = vunpack.c.2.s8 %v1147_v47  ;;  %v1190_v33 = vpack.c.b16 %v1161_v11, %v1161_v11 }
 0x25c   : > { %v941_v60 = vmul.f32 %v916_v59, %v845_v56  ;;  %v911_v61 = vpop.permute.xlu0 %910  ;;  %v1231_v56 = vunpack.c.0.s8 %v1215_v49  ;;  %v1187_v59 = vpack.c.b8 %v1186_v50, %v1186_v50  ;;  %v1189_v45 = vpack.c.b8 %v1188_v26, %v1188_v26 }
 0x25d   : > { %v940_v62 = vmul.f32 %v911_v61, %v844_v57  ;;  %1865 = vmatmul.mubr.bf16.vlgmr.msra.gmra.mrb[0].mxu1 %v949_v58  ;;  %v1181_v57 = vpack.c.b8 %v1180_v46, %v1180_v46  ;;  %v1229_v61 = vunpack.c.0.s8 %v1213_v52  ;;  %vm2875_vm0 = vnez %v1185_v53 }
 0x25e   : > { %vm2884_vm1 = vcmp.ne.s32.totalorder %v1231_v56, 0  ;;  %vm1207_vm3 = vnez %v1187_v59  ;;  %v1222_v16 = vsel %vm2875_vm0, 16843009, %v2419_v24  ;;  %v1195_v46 = vpack.c.b8 %v1194_v27, %v1194_v27 }
 0x25f   : > { %v950_v1 = vpack.c.bf16 %v941_v60, %v940_v62  ;;  %v926_v2 = vpop.permute.xlu1 %925  ;;  %v1218_v62 = vsel %vm1202_vm10, 16843009, %v2419_v24  ;;  %vm1204_vm2 = vnez %v1181_v57  ;;  %vm2888_vm4 = vcmp.ne.s32.totalorder %v1229_v61, 0 }
 0x260   : > { %v943_v3 = vmul.f32 %v926_v2, %v847_v63  ;;  %v921_v4 = vpop.permute.xlu0 %920  ;;  %v1216_v63 = vsel %vm1200_vm11, 16843009, %v2419_v24  ;;  %v1234_v9 = vunpack.c.0.s8 %v1218_v62  ;;  %v1220_v19 = vsel %vm1204_vm2, 16843009, %v2419_v24 }
 0x261   : > { %v942_v5 = vmul.f32 %v921_v4, %v846_v0  ;;  %1868 = vmatprep.mubr.bf16.mxu1 %v950_v1  ;;  %v1219_v0 = vsel %vm1203_vm12, 16843009, %v2419_v24  ;;  %v1217_v1 = vsel %vm1201_vm13, 16843009, %v2419_v24  ;;  %v1192_v4 = vpack.c.b16 %v1162_v55, %v1162_v55 }
 0x262   : > { %v1232_v10 = vunpack.c.0.s8 %v1216_v63  ;;  %v1235_v14 = vunpack.c.0.s8 %v1219_v0  ;;  %v1233_v15 = vunpack.c.0.s8 %v1217_v1  ;;  %v1223_v25 = vsel %vm1207_vm3, 16843009, %v2419_v24 }
 0x263   : > { %v951_v6 = vpack.c.bf16 %v943_v3, %v942_v5  ;;  %v1183_v3 = vpack.c.b8 %v1182_v54, %v1182_v54  ;;  %v2882_v5 = vld [vmem:[%s3233_s19] ss:$0 sm:$0xff]  ;;  %v1193_v21 = vpack.c.b8 %v1192_v4, %v1192_v4  ;;  %vm2904_vm6 = vcmp.ne.s32.totalorder %v1234_v9, 0 }
 0x264   : > { %vm2908_vm7 = vcmp.ne.s32.totalorder %v1232_v10, 0  ;;  %vm2913_vm8 = vcmp.ne.s32.totalorder %v1235_v14, 0  ;;  %v1238_v37 = vunpack.c.0.s8 %v1222_v16  ;;  %vm2920_vm9 = vcmp.ne.s32.totalorder %v1233_v15, 0 }
 0x265   : > { %1869 = vmatmul.mubr.bf16.gmra.mrb[4].mxu1 %v951_v6  ;;  %vm2897_vm5 = vnez %v1183_v3  ;;  %v1236_v41 = vunpack.c.0.s8 %v1220_v19  ;;  %v1239_v42 = vunpack.c.0.s8 %v1223_v25  ;;  %vm1210_vm10 = vnez %v1193_v21 }
 0x266   : > { %v1221_v38 = vsel %vm2897_vm5, 16843009, %v2419_v24  ;;  %v1191_v50 = vpack.c.b8 %v1190_v33, %v1190_v33  ;;  %v2933_v55 = vsel %vm1210_vm10, 16843009, %v2419_v24  ;;  %vm2938_vm11 = vnez %v1189_v45 }
 0x267   : > { %v1237_v49 = vunpack.c.0.s8 %v1221_v38  ;;  %vm2942_vm12 = vnez %v1195_v46  ;;  %vm2948_vm13 = vcmp.ne.s32.totalorder %v1238_v37, 0  ;;  %v1242_v13 = vunpack.c.0.s8 %v2933_v55 }
 0x268   : > { %vm2962_vm0 = vnez %v1191_v50 }
 0x269   : > { %vm3002_vm2 = vcmp.ne.s32.totalorder %v1242_v13, 0 }
 0x321   : > { %v1858_v12 = vpop.f32.mrb[0].mxu0 }
 0x322   : > { %v1066_v17 = vadd.f32 %v1858_v12, %v2882_v5  ;;  %v1057_v18 = vpop.f32.mrb[1].mxu0 }
 0x323   : > { %v1058_v22 = vadd.f32 %v2882_v5, %v1057_v18  ;;  %v1859_v23 = vpop.f32.mrb[2].mxu0 }
 0x324   : > { %v1130_v28 = vmul.f32 2.0, %v1066_v17  ;;  %v1069_v29 = vadd.f32 %v1859_v23, %v2882_v5  ;;  %v1060_v30 = vpop.f32.mrb[3].mxu0  ;;  %v1224_v23 = vsel %vm2938_vm11, 16843009, %v2419_v24 }
 0x325   : > { %v1128_v34 = vmul.f32 2.0, %v1058_v22  ;;  %v1061_v35 = vadd.f32 %v2882_v5, %v1060_v30 }
 0x326   : > { %v1131_v39 = vmul.f32 2.0, %v1069_v29  ;;  %v1262_v47 = vsel %vm2867_vm15, %v1130_v28, 0.0  ;;  %vm2956_vm15 = vcmp.ne.s32.totalorder %v1239_v42, 0 }
 0x327   : > { %v1260_v43 = vsel %vm2863_vm14, %v1128_v34, 0.0  ;;  %v1129_v44 = vmul.f32 2.0, %v1061_v35  ;;  %v1380_v61 = vmul.f32 %v1262_v47, %v1262_v47  ;;  %vm2952_vm14 = vcmp.ne.s32.totalorder %v1236_v41, 0 }
 0x328   : > { %v1263_v48 = vsel %vm2884_vm1, %v1131_v39, 0.0  ;;  %v1378_v51 = vmul.f32 %v1260_v43, %v1260_v43  ;;  %vm2966_vm1 = vcmp.ne.s32.totalorder %v1237_v49, 0  ;;  %v1227_v34 = vsel %vm2942_vm12, 16843009, %v2419_v24 }
 0x329   : > { %v1737_v52 = vpack.c.bf16 %v1263_v48, %v1262_v47  ;;  %v1261_v53 = vsel %vm2888_vm4, %v1129_v44, 0.0  ;;  %v1862_v54 = vpop.f32.mrb[4].mxu0  ;;  %v1381_v15 = vmul.f32 %v1263_v48, %v1263_v48  ;;  %v1225_v44 = vsel %vm2962_vm0, 16843009, %v2419_v24 }
 0x32a   : > { %v1732_v56 = vpack.c.bf16 %v1261_v53, %v1260_v43  ;;  %v1356_v57 = vadd.f32 %v1261_v53, %v1260_v43  ;;  %v1379_v58 = vmul.f32 %v1261_v53, %v1261_v53  ;;  %v1082_v59 = vadd.f32 %v1862_v54, %v2882_v5  ;;  %v1073_v60 = vpop.f32.mrb[5].mxu0 }
 0x32b   : > { %1769 = vst [vmem:[%s2772_s16 + $0x8] sm:$0xff] %v1737_v52   ;;  %v1074_v62 = vadd.f32 %v2882_v5, %v1073_v60  ;;  %v1863_v63 = vpop.f32.mrb[6].mxu0  ;;  %v1243_v52 = vunpack.c.0.s8 %v1227_v34 }
 0x32c   : > { %1733 = vst [vmem:[%s2772_s16] sm:$0xff] %v1732_v56   ;;  %v1357_v2 = vadd.f32 %v1356_v57, %v1262_v47  ;;  %v1394_v3 = vadd.f32 %v1379_v58, %v1378_v51  ;;  %v1134_v4 = vmul.f32 2.0, %v1082_v59  ;;  %v1085_v6 = vadd.f32 %v1863_v63, %v2882_v5  ;;  %v1076_v7 = vpop.f32.mrb[7].mxu0 }
 0x32d   : > { %v1132_v11 = vmul.f32 2.0, %v1074_v62  ;;  %v1077_v12 = vadd.f32 %v2882_v5, %v1076_v7  ;;  %v1240_v51 = vunpack.c.0.s8 %v1224_v23  ;;  %v1241_v59 = vunpack.c.0.s8 %v1225_v44 }
 0x32e   : > { %v1395_v16 = vadd.f32 %v1394_v3, %v1380_v61  ;;  %v1358_v17 = vadd.f32 %v1357_v2, %v1263_v48  ;;  %v1135_v18 = vmul.f32 2.0, %v1085_v6  ;;  %v1266_v20 = vsel %vm2904_vm6, %v1134_v4, 0.0 }
 0x32f   : > { %v1264_v21 = vsel %vm2908_vm7, %v1132_v11, 0.0  ;;  %v1133_v22 = vmul.f32 2.0, %v1077_v12  ;;  %v1384_v45 = vmul.f32 %v1266_v20, %v1266_v20  ;;  %vm3006_vm3 = vcmp.ne.s32.totalorder %v1240_v51, 0 }
 0x330   : > { %v1359_v25 = vadd.f32 %v1358_v17, %v1264_v21  ;;  %v1382_v26 = vmul.f32 %v1264_v21, %v1264_v21  ;;  %v1396_v27 = vadd.f32 %v1395_v16, %v1381_v15  ;;  %v1267_v28 = vsel %vm2913_vm8, %v1135_v18, 0.0  ;;  %v1866_v29 = vpop.f32.mrb[0].mxu1 }
 0x331   : > { %v1747_v30 = vpack.c.bf16 %v1267_v28, %v1266_v20  ;;  %v1265_v31 = vsel %vm2920_vm9, %v1133_v22, 0.0  ;;  %v1098_v32 = vadd.f32 %v1866_v29, %v2882_v5  ;;  %v1089_v33 = vpop.f32.mrb[1].mxu1  ;;  %v1385_v53 = vmul.f32 %v1267_v28, %v1267_v28 }
 0x332   : > { %v1397_v35 = vadd.f32 %v1396_v27, %v1382_v26  ;;  %v1742_v37 = vpack.c.bf16 %v1265_v31, %v1264_v21  ;;  %v1360_v38 = vadd.f32 %v1359_v25, %v1265_v31  ;;  %v1383_v39 = vmul.f32 %v1265_v31, %v1265_v31  ;;  %v1867_v41 = vpop.f32.mrb[2].mxu1 }
 0x333   : > { %1771 = vst [vmem:[%s2772_s16 + $0x18] sm:$0xff] %v1747_v30   ;;  %v1138_v36 = vmul.f32 2.0, %v1098_v32  ;;  %v1090_v42 = vadd.f32 %v2882_v5, %v1089_v33  ;;  %v1101_v40 = vadd.f32 %v1867_v41, %v2882_v5  ;;  %v1092_v43 = vpop.f32.mrb[3].mxu1  ;;  %vm3013_vm4 = vcmp.ne.s32.totalorder %v1243_v52, 0 }
 0x334   : > { %1770 = vst [vmem:[%s2772_s16 + $0x10] sm:$0xff] %v1742_v37   ;;  %v1361_v46 = vadd.f32 %v1360_v38, %v1266_v20  ;;  %v1398_v47 = vadd.f32 %v1397_v35, %v1383_v39  ;;  %v1093_v48 = vadd.f32 %v2882_v5, %v1092_v43  ;;  %vm1257_vm5 = vcmp.ne.s32.totalorder %v1241_v59, 0 }
 0x335   : > { %v1136_v49 = vmul.f32 2.0, %v1090_v42  ;;  %v1139_v50 = vmul.f32 2.0, %v1101_v40  ;;  %v1270_v57 = vsel %vm2948_vm13, %v1138_v36, 0.0 }
 0x336   : > { %v1399_v54 = vadd.f32 %v1398_v47, %v1384_v45  ;;  %v1362_v55 = vadd.f32 %v1361_v46, %v1267_v28  ;;  %v1137_v56 = vmul.f32 2.0, %v1093_v48  ;;  %v1388_v17 = vmul.f32 %v1270_v57, %v1270_v57 }
 0x337   : > { %v1268_v24 = vsel %vm2952_vm14, %v1136_v49, 0.0  ;;  %v1271_v58 = vsel %vm2956_vm15, %v1139_v50, 0.0 }
 0x338   : > { %v1363_v60 = vadd.f32 %v1362_v55, %v1268_v24  ;;  %v1386_v61 = vmul.f32 %v1268_v24, %v1268_v24  ;;  %v1400_v62 = vadd.f32 %v1399_v54, %v1385_v53  ;;  %v1757_v63 = vpack.c.bf16 %v1271_v58, %v1270_v57  ;;  %v1870_v0 = vpop.f32.mrb[4].mxu1 }
 0x339   : > { %v1269_v1 = vsel %vm2966_vm1, %v1137_v56, 0.0  ;;  %v1114_v2 = vadd.f32 %v1870_v0, %v2882_v5  ;;  %v1105_v4 = vpop.f32.mrb[5].mxu1  ;;  %v1389_v23 = vmul.f32 %v1271_v58, %v1271_v58 }
 0x33a   : > { %v1401_v7 = vadd.f32 %v1400_v62, %v1386_v61  ;;  %1773 = vst [vmem:[%s2772_s16 + $0x28] sm:$0xff] %v1757_v63   ;;  %v1752_v8 = vpack.c.bf16 %v1269_v1, %v1268_v24  ;;  %v1364_v9 = vadd.f32 %v1363_v60, %v1269_v1  ;;  %v1387_v10 = vmul.f32 %v1269_v1, %v1269_v1  ;;  %v1871_v11 = vpop.f32.mrb[6].mxu1 }
 0x33b   : > { %v1142_v12 = vmul.f32 2.0, %v1114_v2  ;;  %v1106_v14 = vadd.f32 %v2882_v5, %v1105_v4  ;;  %v1117_v15 = vadd.f32 %v1871_v11, %v2882_v5  ;;  %v1108_v16 = vpop.f32.mrb[7].mxu1 }
 0x33c   : > { %1772 = vst [vmem:[%s2772_s16 + $0x20] sm:$0xff] %v1752_v8   ;;  %v1365_v18 = vadd.f32 %v1364_v9, %v1270_v57  ;;  %v1402_v19 = vadd.f32 %v1401_v7, %v1387_v10  ;;  %v1109_v20 = vadd.f32 %v2882_v5, %v1108_v16 }
 0x33d   : > { %v1140_v21 = vmul.f32 2.0, %v1106_v14  ;;  %v1143_v22 = vmul.f32 2.0, %v1117_v15  ;;  %v1274_v28 = vsel %vm3002_vm2, %v1142_v12, 0.0 }
 0x33e   : > { %v1403_v25 = vadd.f32 %v1402_v19, %v1388_v17  ;;  %v1366_v26 = vadd.f32 %v1365_v18, %v1271_v58  ;;  %v1141_v27 = vmul.f32 2.0, %v1109_v20  ;;  %v1392_v41 = vmul.f32 %v1274_v28, %v1274_v28 }
 0x33f   : > { %v1272_v29 = vsel %vm3006_vm3, %v1140_v21, 0.0  ;;  %v1275_v30 = vsel %vm3013_vm4, %v1143_v22, 0.0 }
 0x340   : > { %v1367_v31 = vadd.f32 %v1366_v26, %v1272_v29  ;;  %v1390_v5 = vmul.f32 %v1272_v29, %v1272_v29  ;;  %v1404_v32 = vadd.f32 %v1403_v25, %v1389_v23  ;;  %v1767_v33 = vpack.c.bf16 %v1275_v30, %v1274_v28 }
 0x341   : > { %v1273_v34 = vsel %vm1257_vm5, %v1141_v27, 0.0  ;;  %v1393_v40 = vmul.f32 %v1275_v30, %v1275_v30 }
 0x342   : > { %v1405_v35 = vadd.f32 %v1404_v32, %v1390_v5  ;;  %1775 = vst [vmem:[%s2772_s16 + $0x38] sm:$0xff] %v1767_v33   ;;  %v1762_v37 = vpack.c.bf16 %v1273_v34, %v1272_v29  ;;  %v1368_v38 = vadd.f32 %v1367_v31, %v1273_v34  ;;  %v1391_v39 = vmul.f32 %v1273_v34, %v1273_v34 }
 0x344   : > { %1774 = vst [vmem:[%s2772_s16 + $0x30] sm:$0xff] %v1762_v37   ;;  %v1369_v36 = vadd.f32 %v1368_v38, %v1274_v28  ;;  %v1406_v42 = vadd.f32 %v1405_v35, %v1391_v39 }
 0x346   : > { %v1370_v43 = vadd.f32 %v1369_v36, %v1275_v30  ;;  %v1407_v44 = vadd.f32 %v1406_v42, %v1392_v41 }
 0x348   : > { %v1371_v45 = vrot.slane %v1370_v43, 4  ;;  %v1408_v46 = vadd.f32 %v1407_v44, %v1393_v40 }
 0x34a   : > { %v1372_v47 = vadd.f32 %v1371_v45, %v1370_v43  ;;  %v1409_v48 = vrot.slane %v1408_v46, 4 }
 0x34c   : > { %v1373_v49 = vrot.slane %v1372_v47, 2  ;;  %v1410_v50 = vadd.f32 %v1409_v48, %v1408_v46 }
 0x34e   : > { %v1374_v51 = vadd.f32 %v1373_v49, %v1372_v47  ;;  %v1411_v52 = vrot.slane %v1410_v50, 2 }
 0x350   : > { %v1375_v53 = vrot.slane %v1374_v51, 1  ;;  %v1412_v54 = vadd.f32 %v1411_v52, %v1410_v50 }
 0x352   : > { %v1376_v55 = vadd.f32 %v1375_v53, %v1374_v51  ;;  %v1413_v56 = vrot.slane %v1412_v54, 1 }
 0x354   : > { %1377 = vst [vmem:[%s391_s3] sm:$0x1] %v1376_v55  ;;  %v1414_v57 = vadd.f32 %v1413_v56, %v1412_v54 }
 0x356   : > { %1415 = vst [vmem:[%s3193_s6] sm:$0x1] %v1414_v57 }
 0x357 PF: > { %s3268_s5 = sld [smem:[#allocation22_spill]]  ;;  %s1421_s21 = sand.u32 1, %s2519_s12  }
 0x358   : > { %s3269_s14 = sld [smem:[#allocation30_spill]]  ;;  %s1454_s2 = sshll.u32 %s391_s3, 4  ;;  %s3042_s2 = int_to_ptr.vmem [resolvable:$true] %s1454_s2 }
 0x359   : > { %s3045_s13 = scalar_lea.sflag [#allocation14], %s1421_s21  ;;  %s2217_s30 = scalar_lea.vmem %s3042_s2, 16 }
 0x35a   : > { %p2218_p8 = scmp.ne.s32.totalorder %s3042_s2, %s2217_s30  ;;  %s2420_s12 = smov [#allocation13]  }
 0x35b   : > { %s2221_s23 = sshll.u32 %s2420_s12, 4  ;;  %s2222_s23 = int_to_ptr.vmem [resolvable:$false] %s2221_s23 }
 0x35c   : > { %p2219_p12 = pnand %p2218_p8, %p2698_p4  ;;  %s2223_s19 = scalar_lea.vmem %s2222_s23, 32 }
 0x35d   : > { %s1706_s24 = sshll.u32 %s3268_s5, 4  ;;  %s1728_s8 = sshll.u32 %s3268_s5, 10 }
 0x35e   : > { %s3038_s15 = scalar_lea.hbm %s3269_s14, %s1706_s24  ;;  %p2220_p2 = pneg %p2219_p12 }
 0x35f   : > { %p2224_p11 = scmp.lt.s32.totalorder %s3042_s2, %s2222_s23  ;;  %p2225_p0 = scmp.lt.s32.totalorder %s2223_s19, %s2217_s30 }
 0x361   : > { %p2226_p1 = por %p2225_p0, %p2224_p11 }
 0x363   : > { %p2227_p10 = pnand %p2226_p1, %p2220_p2 }
 0x365   : > { %2230 = shalt.err (!%p2227_p10)
}
 0x366   : > { %s2231_s3 = scalar_lea.hbm %s3038_s15, 16  ;;  %s2235_s7 = scalar_lea.hbm %s3269_s14, 32 }
 0x367   : > { %p2232_p7 = scmp.ne.s32.totalorder %s3038_s15, %s2231_s3  ;;  %p2236_p6 = scmp.lt.u32.totalorder %s3038_s15, %s3269_s14 }
 0x368   : > { %p2237_p5 = scmp.lt.u32.totalorder %s2235_s7, %s2231_s3  ;;  %p2239_p8 = scmp.lt.u32.totalorder %s2231_s3, %s3038_s15 }
 0x369   : > { %p2233_p3 = pnand %p2232_p7, %p2698_p4 }
 0x36a   : > { %p2238_p9 = por %p2237_p5, %p2236_p6 }
 0x36b   : > { %p2234_p13 = pneg %p2233_p3 }
 0x36c   : > { %p2240_p12 = por %p2239_p8, %p2238_p9 }
 0x36e   : > { %p2241_p2 = pnand %p2240_p12, %p2234_p13 }
 0x370   : > { %2244 = shalt.err (!%p2241_p2)
}
 0x371   : > { %1917 = dma.vmem_to_hbm [thread:$0]  (%p2698_p4), %s3042_s2, 16, %s3038_s15, %s3045_s13  }
 0x372   : > { %s3270_s21 = sld [smem:[#allocation29_spill]]  ;;  %s1438_s3 = sshll.u32 %s2772_s16, 4  ;;  %s3077_s3 = int_to_ptr.vmem [resolvable:$true] %s1438_s3 }
 0x373   : > { %s3271_s23 = sld [smem:[#allocation31_spill]]  ;;  %s1417_s0 = scalar_lea.sflag [#allocation6], %s2761_s17 }
 0x374   : > { %s2245_s15 = scalar_lea.vmem %s3077_s3, 1024  ;;  %s2421_s2 = smov [#allocation12]  }
 0x375   : > { %p2246_p11 = scmp.ne.s32.totalorder %s3077_s3, %s2245_s15 }
 0x377   : > { %p2247_p0 = pnand %p2246_p11, %p2698_p4 }
 0x378   : > { %s3074_s27 = scalar_lea.hbm %s3270_s21, %s1728_s8  ;;  %s2249_s8 = sshll.u32 %s2421_s2, 4  ;;  %s2250_s8 = int_to_ptr.vmem [resolvable:$false] %s2249_s8 }
 0x379   : > { %s3084_s6 = scalar_lea.hbm %s3271_s23, %s1706_s24  ;;  %p2248_p1 = pneg %p2247_p0 }
 0x37a   : > { %s2251_s16 = scalar_lea.vmem %s2250_s8, 2048  ;;  %p2252_p10 = scmp.lt.s32.totalorder %s3077_s3, %s2250_s8 }
 0x37b   : > { %p2253_p7 = scmp.lt.s32.totalorder %s2251_s16, %s2245_s15 }
 0x37d   : > { %p2254_p3 = por %p2253_p7, %p2252_p10 }
 0x37f   : > { %p2255_p13 = pnand %p2254_p3, %p2248_p1 }
 0x381   : > { %2258 = shalt.err (!%p2255_p13)
}
 0x382   : > { %s2259_s5 = scalar_lea.hbm %s3074_s27, 1024  ;;  %s2263_s19 = scalar_lea.hbm %s3270_s21, 2048 }
 0x383   : > { %p2260_p6 = scmp.ne.s32.totalorder %s3074_s27, %s2259_s5  ;;  %p2264_p8 = scmp.lt.u32.totalorder %s3074_s27, %s3270_s21 }
 0x384   : > { %p2265_p12 = scmp.lt.u32.totalorder %s2263_s19, %s2259_s5  ;;  %p2267_p11 = scmp.lt.u32.totalorder %s2259_s5, %s3074_s27 }
 0x385   : > { %p2261_p5 = pnand %p2260_p6, %p2698_p4 }
 0x386   : > { %p2266_p2 = por %p2265_p12, %p2264_p8 }
 0x387   : > { %p2262_p9 = pneg %p2261_p5 }
 0x388   : > { %p2268_p0 = por %p2267_p11, %p2266_p2 }
 0x38a   : > { %p2269_p1 = pnand %p2268_p0, %p2262_p9 }
 0x38c   : > { %2272 = shalt.err (!%p2269_p1)
}
 0x38d   : > { %s2422_s15 = smov 64   ;;  %s2423_s2 = smov 4  }
 0x38e   : > { %1916 = dma.vmem_to_hbm [thread:$0]  (%p2698_p4), %s3077_s3, 1024, %s3074_s27, %s1417_s0, %s2422_s15, %s2422_s15, %s2423_s2  }
 0x38f   : > { %s3272_s8 = scalar_lea.vmem [#allocation15], %s2761_s17  ;;  %s2424_s5 = smov [#allocation15]  }
 0x390   : > { %s1467_s16 = sshll.u32 %s3272_s8, 4  ;;  %s2277_s30 = sshll.u32 %s2424_s5, 4  ;;  %s1468_s16 = int_to_ptr.vmem [resolvable:$true] %s1467_s16  ;;  %s2278_s30 = int_to_ptr.vmem [resolvable:$false] %s2277_s30 }
 0x391   : > { %s2273_s24 = scalar_lea.vmem %s1468_s16, 16  ;;  %s2279_s19 = scalar_lea.vmem %s2278_s30, 32 }
 0x392   : > { %p2274_p10 = scmp.ne.s32.totalorder %s1468_s16, %s2273_s24  ;;  %p2280_p13 = scmp.lt.s32.totalorder %s1468_s16, %s2278_s30 }
 0x393   : > { %p2281_p6 = scmp.lt.s32.totalorder %s2279_s19, %s2273_s24 }
 0x394   : > { %p2275_p7 = pnand %p2274_p10, %p2698_p4 }
 0x395   : > { %p2282_p5 = por %p2281_p6, %p2280_p13 }
 0x396   : > { %p2276_p3 = pneg %p2275_p7 }
 0x398   : > { %p2283_p9 = pnand %p2282_p5, %p2276_p3 }
 0x39a   : > { %2286 = shalt.err (!%p2283_p9)
}
 0x39b   : > { %s2287_s0 = scalar_lea.hbm %s3084_s6, 16  ;;  %s2291_s3 = scalar_lea.hbm %s3271_s23, 32 }
 0x39c   : > { %p2288_p8 = scmp.ne.s32.totalorder %s3084_s6, %s2287_s0  ;;  %p2292_p11 = scmp.lt.u32.totalorder %s3084_s6, %s3271_s23 }
 0x39d   : > { %p2293_p0 = scmp.lt.u32.totalorder %s2291_s3, %s2287_s0  ;;  %p2295_p10 = scmp.lt.u32.totalorder %s2287_s0, %s3084_s6 }
 0x39e   : > { %p2289_p12 = pnand %p2288_p8, %p2698_p4 }
 0x39f   : > { %p2294_p1 = por %p2293_p0, %p2292_p11 }
 0x3a0   : > { %p2290_p2 = pneg %p2289_p12 }
 0x3a1   : > { %p2296_p7 = por %p2295_p10, %p2294_p1 }
 0x3a3   : > { %p2297_p3 = pnand %p2296_p7, %p2290_p2 }
 0x3a5   : > { %2300 = shalt.err (!%p2297_p3)
}
 0x3a6   : > { %1918 = dma.vmem_to_hbm [thread:$0]  (%p2698_p4), %s1468_s16, 16, %s3084_s6, %s3045_s13  }
 0x3a7 PF: > { %s3273_s15 = sld [smem:[#allocation21_spill]]  ;;  %s3274_s2 = sld [smem:[#allocation23_spill]] }
 0x3a8   : > { %p1951_p13 = scmp.ge.s32.totalorder %s2407_s11, 2 }
 0x3ad   : > { %s1479_s8 = sand.u32 1, %s3273_s15   ;;  %p3275_p6 = scmp.ne.s32.totalorder %s3274_s2, 0 }
 0x3ae   : > { %s1480_s24 = scalar_lea.sflag [#allocation6], %s1479_s8 }
 0x3af   : > { %p1937_p5 = pnand %p1951_p13, %p3275_p6 }
 0x3b1   : > { %2358 = dma.done.wait (!%p1937_p5), %s1480_s24, 1024  }
 0x3b2   : > { %2360 = vsyncadd (!%p1937_p5), %s1480_s24, 4294966272  ;;  %s3276_s5 = sadd.s32 4294967294, %s2407_s11  }
 0x3b3   : > { %s1488_s30 = sand.u32 1, %s3276_s5  }
 0x3b4   : > { %s1489_s19 = scalar_lea.sflag [#allocation14], %s1488_s30 }
 0x3b5   : > { %2362 = dma.done.wait (!%p1937_p5), %s1489_s19, 32  }
 0x3b6   : > { %2364 = vsyncadd (!%p1937_p5), %s1489_s19, 4294967264  ;;  %s31_s11 = sadd.s32 1, %s2407_s11   ;;  %s3277_s22 = sld [smem:[#allocation24_spill]] }
 0x3b7   : > { %p28_p4 = scmp.ge.s32.totalorder %s31_s11, 6   ;;  %s3278_s24 = smov %s2371_s25 }
 0x3b8   : > { %s3279_s25 = smov %s2375_s26  ;;  %s3280_s26 = smov %s2692_s18 }
 0x3b9   : > { %s3281_s27 = smov %s2383_s28  ;;  %s3282_s28 = smov %s2387_s29 }
 0x3ba   : > { %s3283_s29 = smov %s2638_s1  ;;  %s3284_s30 = smov %s2399_s9 }
 0x3bb   : > { %s3285_s8 = smov %s2403_s10  ;;  %s3287_s10 = smov %s3293_s20 }
 0x3bc   : > { %s3286_s9 = smov %s3277_s22  ;;  %30 = sbr.rel (!%p28_p4) target bundleno = 22 (0x16), region = 147 }
 0x3c3   :  { %1501 = vsyncpa [#allocation5], 1 }
 0x3c4   :  { %1503 = vsyncpa [#allocation5 + $0x1], 1 }
 0x3c5   :  { %1504 = vsyncpa [#allocation8], 1 }
 0x3c6   :  { %1505 = vsyncpa [#allocation11], 1 }
 0x3c7   :  { %1507 = vsyncpa [#allocation11 + $0x1], 1 }
 0x3c8   :  { %1508 = vsyncpa [#allocation6], 1 }
 0x3c9   :  { %1510 = vsyncpa [#allocation6 + $0x1], 1 }
 0x3ca   :  { %1511 = vsyncpa [#allocation14], 1 }
 0x3cb   :  { %1513 = vsyncpa [#allocation14 + $0x1], 1 }

</bundles_post_ra>
